<compile_context>
chip_gen: v7x
topology: tpu7x:2x2x1
jax: 0.10.0
libtpu: 0.0.40
codegen_flags: <defaults>
</compile_context>

<pallas_src>
import jax
import jax.numpy as jnp
from jax.experimental import pallas as pl
from jax.experimental.pallas import tpu as pltpu

# ---- Small synthetic config mirroring Bezier_MLP_Action's structure ----
INPUT_DIM = 64                      # stands in for 4096
ACTION_DIM = 2
ACTION_CHUNK_PER_CURVE = 2
IN_FEATURES = INPUT_DIM * ACTION_DIM * ACTION_CHUNK_PER_CURVE   # 256
MLP_HIDDEN = 128                    # stands in for 4096
DEC_HIDDEN = 128                    # stands in for 1024
CONTINUOUS_DIM = ACTION_DIM * ACTION_CHUNK_PER_CURVE            # 4  (orig: 14)
TOKEN_SEQ_LEN = 30                  # TOKEN_SEQUENCE_LINE
TOTAL_OUTPUT = CONTINUOUS_DIM + TOKEN_SEQ_LEN                   # 34
OUT_PAD = 128                       # lane-dense padded last-layer width
TOK_LANE = TOTAL_OUTPUT             # padding lane carrying the token id
BATCH = 2
SEQ_LEN = 4                         # NUM_ACTIONS_CHUNK // ACTION_CHUNK_PER_CURVE

# Layer-1 reduction tile (512-1024 at real size; whole reduction at toy size).
TK = min(512, IN_FEATURES)
assert IN_FEATURES % TK == 0
TM_CAP = 256                        # M-tile cap (fills the 256-row MXU)


def _round_up(x, m):
    return (x + m - 1) // m * m


def _bezier_mlp_kernel(x_ref, w1_ref, b1_ref, w2_ref, b2_ref, w3_ref, b3_ref,
                       w4_ref, b4_ref, w5_ref, b5_ref, out_ref, acc_ref):
    f32, bf16 = jnp.float32, jnp.bfloat16
    k = pl.program_id(1)

    @pl.when(k == 0)
    def _():
        acc_ref[...] = jnp.zeros_like(acc_ref)

    # Layer-1 partial product for this K tile (bf16 operands, f32 MXU acc).
    acc_ref[...] += jnp.dot(x_ref[...], w1_ref[...], preferred_element_type=f32)

    @pl.when(k == pl.num_programs(1) - 1)
    def _():
        # --- self.mlp tail: bias + ReLU -> (Dropout=id) -> Linear -> ReLU ---
        h = jnp.maximum(acc_ref[...] + b1_ref[...], 0.0)
        h = jnp.dot(h.astype(bf16), w2_ref[...], preferred_element_type=f32) + b2_ref[...]
        h = jnp.maximum(h, 0.0)
        # --- self.decoder: Linear->ReLU->(Drop)->Linear->ReLU->(Drop)->Linear ---
        d = jnp.dot(h.astype(bf16), w3_ref[...], preferred_element_type=f32) + b3_ref[...]
        d = jnp.maximum(d, 0.0)
        d = jnp.dot(d.astype(bf16), w4_ref[...], preferred_element_type=f32) + b4_ref[...]
        d = jnp.maximum(d, 0.0)
        out = jnp.dot(d.astype(bf16), w5_ref[...], preferred_element_type=f32) + b5_ref[...]

        # First-occurrence argmax over the token logits on the full padded row
        # (iota mask -> no unaligned lane slice; padding lanes become -inf).
        lane = jax.lax.broadcasted_iota(jnp.int32, out.shape, 1)
        is_logit = (lane >= CONTINUOUS_DIM) & (lane < CONTINUOUS_DIM + TOKEN_SEQ_LEN)
        masked = jnp.where(is_logit, out, -jnp.inf)
        row_max = jnp.max(masked, axis=-1, keepdims=True)
        cand = jnp.where(masked == row_max, lane, OUT_PAD)
        arg_abs = jnp.min(cand, axis=-1, keepdims=True)        # absolute lane index
        tok = (arg_abs - CONTINUOUS_DIM + 1).astype(f32)        # (TM, 1), in [1, TOK]

        # Single lane-dense slab: [0,CONT)=floats, [CONT,CONT+TOK)=logits,
        # lane TOK_LANE carries the token id (small int, exact in f32),
        # remaining padding lanes stay zero.
        packed = jnp.where(lane == TOK_LANE, jnp.broadcast_to(tok, out.shape), out)
        out_ref[...] = packed.astype(out_ref.dtype)


def _init_linear(key, fan_in, fan_out, pad_to=None):
    """PyTorch-style uniform(-1/sqrt(fan_in), ...) init; weight stored (in, out) bf16."""
    kw, kb = jax.random.split(key)
    bound = 1.0 / (fan_in ** 0.5)
    w = jax.random.uniform(kw, (fan_in, fan_out), jnp.float32, -bound, bound)
    b = jax.random.uniform(kb, (1, fan_out), jnp.float32, -bound, bound)
    if pad_to is not None and pad_to > fan_out:
        w = jnp.pad(w, ((0, 0), (0, pad_to - fan_out)))
        b = jnp.pad(b, ((0, 0), (0, pad_to - fan_out)))
    return w.astype(jnp.bfloat16), b.astype(jnp.float32)


def init_params(seed=0):
    keys = jax.random.split(jax.random.PRNGKey(seed), 5)
    w1, b1 = _init_linear(keys[0], IN_FEATURES, MLP_HIDDEN)
    w2, b2 = _init_linear(keys[1], MLP_HIDDEN, MLP_HIDDEN)
    w3, b3 = _init_linear(keys[2], MLP_HIDDEN, DEC_HIDDEN)
    w4, b4 = _init_linear(keys[3], DEC_HIDDEN, DEC_HIDDEN)
    w5, b5 = _init_linear(keys[4], DEC_HIDDEN, TOTAL_OUTPUT, pad_to=OUT_PAD)
    return (w1, b1, w2, b2, w3, b3, w4, b4, w5, b5)


def _build_forward_call(tm, m_pad, single_buffer_residents):
    grid = (m_pad // tm, IN_FEATURES // TK)

    res_kwargs = {}
    if single_buffer_residents:
        # Constant index_map -> one buffer is enough; halves resident VMEM.
        res_kwargs = dict(pipeline_mode=pl.Buffered(1))

    def resident(shape):
        return pl.BlockSpec(shape, lambda i, k: (0, 0), **res_kwargs)

    in_specs = [
        pl.BlockSpec((tm, TK), lambda i, k: (i, k)),              # x (bf16)
        pl.BlockSpec((TK, MLP_HIDDEN), lambda i, k: (k, 0)),      # w1 (streamed over K)
        resident((1, MLP_HIDDEN)),                                # b1
        resident((MLP_HIDDEN, MLP_HIDDEN)),                       # w2
        resident((1, MLP_HIDDEN)),                                # b2
        resident((MLP_HIDDEN, DEC_HIDDEN)),                       # w3
        resident((1, DEC_HIDDEN)),                                # b3
        resident((DEC_HIDDEN, DEC_HIDDEN)),                       # w4
        resident((1, DEC_HIDDEN)),                                # b4
        resident((DEC_HIDDEN, OUT_PAD)),                          # w5 (lane-padded)
        resident((1, OUT_PAD)),                                   # b5 (lane-padded)
    ]
    out_specs = pl.BlockSpec((tm, OUT_PAD), lambda i, k: (i, 0))
    out_shape = jax.ShapeDtypeStruct((m_pad, OUT_PAD), jnp.float32)

    # ---- explicit VMEM budget (conservative: double buffers everywhere) ----
    resident_w_bytes = 2 * (MLP_HIDDEN * MLP_HIDDEN + MLP_HIDDEN * DEC_HIDDEN
                            + DEC_HIDDEN * DEC_HIDDEN + DEC_HIDDEN * OUT_PAD)
    resident_b_bytes = 4 * (2 * MLP_HIDDEN + 2 * DEC_HIDDEN + OUT_PAD)
    need = (2 * tm * TK * 2                         # x tile (bf16, 2 bufs)
            + 2 * TK * MLP_HIDDEN * 2               # w1 tile (bf16, 2 bufs)
            + 2 * (resident_w_bytes + resident_b_bytes)
            + 2 * tm * OUT_PAD * 4                  # output tile (f32, 2 bufs)
            + tm * MLP_HIDDEN * 4)                  # accumulator scratch
    vmem_limit = int(min(128 * 1024 * 1024, max(2 * need, 32 * 1024 * 1024)))

    # ---- cost estimate: W1 is re-streamed once per M tile ----
    m_tiles = m_pad // tm
    flops = 2 * m_pad * (IN_FEATURES * MLP_HIDDEN + MLP_HIDDEN * MLP_HIDDEN
                         + MLP_HIDDEN * DEC_HIDDEN + DEC_HIDDEN * DEC_HIDDEN
                         + DEC_HIDDEN * OUT_PAD)
    bytes_accessed = (m_pad * IN_FEATURES * 2
                      + m_tiles * IN_FEATURES * MLP_HIDDEN * 2
                      + resident_w_bytes + resident_b_bytes
                      + m_pad * OUT_PAD * 4)

    return pl.pallas_call(
        _bezier_mlp_kernel,
        grid_spec=pltpu.PrefetchScalarGridSpec(
            num_scalar_prefetch=0,
            grid=grid,
            in_specs=in_specs,
            out_specs=out_specs,
            scratch_shapes=[pltpu.VMEM((tm, MLP_HIDDEN), jnp.float32)],
        ),
        out_shape=out_shape,
        compiler_params=pltpu.CompilerParams(
            dimension_semantics=("parallel", "arbitrary"),
            vmem_limit_bytes=vmem_limit),
        cost_estimate=pl.CostEstimate(flops=flops, transcendentals=0,
                                      bytes_accessed=bytes_accessed),
    )


def bezier_mlp_forward(x, params):
    """Pallas equivalent of Bezier_MLP_Action.forward.

    x: (M, IN_FEATURES) f32.  Returns (floats (M, CONTINUOUS_DIM) f32,
    tokens (M,) int32 in [1, TOKEN_SEQ_LEN])."""
    m = x.shape[0]
    tm = min(TM_CAP, _round_up(max(m, 1), 16))   # bf16 packs 16 rows per vreg
    m_pad = _round_up(m, tm)
    x = x.astype(jnp.bfloat16)                   # cast once in the wrapper
    if m_pad != m:
        x = jnp.pad(x, ((0, m_pad - m), (0, 0)))

    try:
        packed = _build_forward_call(tm, m_pad, single_buffer_residents=True)(x, *params)
    except Exception:
        # pl.Buffered(1) not accepted by this JAX/Mosaic build -> default buffering.
        packed = _build_forward_call(tm, m_pad, single_buffer_residents=False)(x, *params)

    floats = packed[:m, :CONTINUOUS_DIM]
    tokens = packed[:m, TOK_LANE].astype(jnp.int32)   # exact small ints in f32
    return floats, tokens


def bezier_mlp_reference(x, params):
    """Pure-JAX reference with the same bf16-weight / f32-accumulate semantics."""
    (w1, b1, w2, b2, w3, b3, w4, b4, w5, b5) = params
    f32, bf16 = jnp.float32, jnp.bfloat16

    def dot(a, w):
        return jnp.dot(a.astype(bf16), w, preferred_element_type=f32)

    h = jnp.maximum(dot(x, w1) + b1, 0.0)
    h = jnp.maximum(dot(h, w2) + b2, 0.0)
    d = jnp.maximum(dot(h, w3) + b3, 0.0)
    d = jnp.maximum(dot(d, w4) + b4, 0.0)
    out = dot(d, w5) + b5
    floats = out[:, :CONTINUOUS_DIM]
    logits = out[:, CONTINUOUS_DIM:CONTINUOUS_DIM + TOKEN_SEQ_LEN]
    tokens = jnp.argmax(logits, axis=-1).astype(jnp.int32) + 1
    return floats, tokens


def predict_action(actions_hidden_states, params, seq_len=SEQ_LEN):
    """Mirrors Bezier_MLP_Action.predict_action, but folds all seq steps into
    ONE pallas_call (B*seq rows) instead of a per-timestep Python loop of calls."""
    b = actions_hidden_states.shape[0]
    x = actions_hidden_states.reshape(b, seq_len, IN_FEATURES)
    floats, tokens = bezier_mlp_forward(x.reshape(b * seq_len, IN_FEATURES), params)
    return (floats.reshape(b, seq_len, CONTINUOUS_DIM),
            tokens.reshape(b, seq_len))


if __name__ == "__main__":
    params = init_params(seed=0)
    kx, kh = jax.random.split(jax.random.PRNGKey(0))
    x = jax.random.normal(kx, (BATCH, IN_FEATURES), dtype=jnp.float32)

    floats, tokens = bezier_mlp_forward(x, params)
    jax.block_until_ready((floats, tokens))

    assert floats.shape == (BATCH, CONTINUOUS_DIM) and floats.dtype == jnp.float32
    assert tokens.shape == (BATCH,) and tokens.dtype == jnp.int32
    assert bool(jnp.all(tokens >= 1)) and bool(jnp.all(tokens <= TOKEN_SEQ_LEN))

    ref_f, ref_t = bezier_mlp_reference(x, params)
    assert bool(jnp.allclose(floats, ref_f, atol=1e-2, rtol=1e-2))
    assert bool(jnp.all(tokens == ref_t))

    # predict_action path: all seq steps folded into a single kernel launch.
    hs = jax.random.normal(kh, (BATCH, SEQ_LEN * IN_FEATURES), dtype=jnp.float32)
    act_f, act_t = predict_action(hs, params, seq_len=SEQ_LEN)
    jax.block_until_ready((act_f, act_t))
    assert act_f.shape == (BATCH, SEQ_LEN, CONTINUOUS_DIM)
    assert act_t.shape == (BATCH, SEQ_LEN)
    assert bool(jnp.all(act_t >= 1)) and bool(jnp.all(act_t <= TOKEN_SEQ_LEN))

    print("KERNEL_OK")
</pallas_src>

<mosaic_0001>
module attributes {stable_mosaic.version = 11 : i64} {
  func.func @_bezier_mlp_kernel(%arg0: i32, %arg1: i32, %arg2: memref<16x256xbf16, #tpu.memory_space<vmem>>, %arg3: memref<256x128xbf16, #tpu.memory_space<vmem>>, %arg4: memref<1x128xf32, #tpu.memory_space<vmem>>, %arg5: memref<128x128xbf16, #tpu.memory_space<vmem>>, %arg6: memref<1x128xf32, #tpu.memory_space<vmem>>, %arg7: memref<128x128xbf16, #tpu.memory_space<vmem>>, %arg8: memref<1x128xf32, #tpu.memory_space<vmem>>, %arg9: memref<128x128xbf16, #tpu.memory_space<vmem>>, %arg10: memref<1x128xf32, #tpu.memory_space<vmem>>, %arg11: memref<128x128xbf16, #tpu.memory_space<vmem>>, %arg12: memref<1x128xf32, #tpu.memory_space<vmem>>, %arg13: memref<16x128xf32, #tpu.memory_space<vmem>>, %arg14: memref<16x128xf32, #tpu.memory_space<vmem>>) attributes {dimension_semantics = [#tpu.dimension_semantics<parallel>, #tpu.dimension_semantics<arbitrary>], iteration_bounds = array<i64: 1, 1>, scalar_prefetch = 0 : i64, scratch_operands = 1 : i64, tpu.core_type = #tpu.core_type<tc>, window_params = [{transform_indices = @transform_0, window_bounds = array<i64: 16, 256>}, {transform_indices = @transform_1, window_bounds = array<i64: 256, 128>}, {pipeline_mode = #tpu.pipeline_mode<synchronous>, transform_indices = @transform_2, window_bounds = array<i64: 1, 128>}, {pipeline_mode = #tpu.pipeline_mode<synchronous>, transform_indices = @transform_3, window_bounds = array<i64: 128, 128>}, {pipeline_mode = #tpu.pipeline_mode<synchronous>, transform_indices = @transform_4, window_bounds = array<i64: 1, 128>}, {pipeline_mode = #tpu.pipeline_mode<synchronous>, transform_indices = @transform_5, window_bounds = array<i64: 128, 128>}, {pipeline_mode = #tpu.pipeline_mode<synchronous>, transform_indices = @transform_6, window_bounds = array<i64: 1, 128>}, {pipeline_mode = #tpu.pipeline_mode<synchronous>, transform_indices = @transform_7, window_bounds = array<i64: 128, 128>}, {pipeline_mode = #tpu.pipeline_mode<synchronous>, transform_indices = @transform_8, window_bounds = array<i64: 1, 128>}, {pipeline_mode = #tpu.pipeline_mode<synchronous>, transform_indices = @transform_9, window_bounds = array<i64: 128, 128>}, {pipeline_mode = #tpu.pipeline_mode<synchronous>, transform_indices = @transform_10, window_bounds = array<i64: 1, 128>}, {transform_indices = @transform_11, window_bounds = array<i64: 16, 128>}]} {
    %c0_i32 = arith.constant 0 : i32
    %0 = arith.cmpi eq, %arg1, %c0_i32 : i32
    %1 = arith.extui %0 : i1 to i32
    %c0_i32_0 = arith.constant 0 : i32
    %2 = arith.cmpi ne, %1, %c0_i32_0 : i32
    scf.if %2 {
      %cst_10 = arith.constant 0.000000e+00 : f32
      %12 = vector.broadcast %cst_10 : f32 to vector<16x128xf32>
      %c0_11 = arith.constant 0 : index
      %c0_12 = arith.constant 0 : index
      %13 = vector.load %arg14[%c0_11, %c0_12] : memref<16x128xf32, #tpu.memory_space<vmem>>, vector<16x128xf32>
      tpu.vector_store %arg14[%c0_11, %c0_12], %12 {strides = array<i32>} : memref<16x128xf32, #tpu.memory_space<vmem>>, vector<16x128xf32>,
    } else {
    }
    %c0 = arith.constant 0 : index
    %c0_1 = arith.constant 0 : index
    %3 = vector.load %arg14[%c0, %c0_1] : memref<16x128xf32, #tpu.memory_space<vmem>>, vector<16x128xf32>
    %c0_2 = arith.constant 0 : index
    %c0_3 = arith.constant 0 : index
    %4 = vector.load %arg2[%c0_2, %c0_3] : memref<16x256xbf16, #tpu.memory_space<vmem>>, vector<16x256xbf16>
    %c0_4 = arith.constant 0 : index
    %c0_5 = arith.constant 0 : index
    %5 = vector.load %arg3[%c0_4, %c0_5] : memref<256x128xbf16, #tpu.memory_space<vmem>>, vector<256x128xbf16>
    %cst = arith.constant dense<0.000000e+00> : vector<16x128xf32>
    %6 = tpu.matmul %4, %5, %cst {dimension_numbers = #tpu.dot_dimension_numbers<[1], [0], [0], [1], [0, 0, 1, 1], [], []>} : vector<16x256xbf16>, vector<256x128xbf16>, vector<16x128xf32> -> vector<16x128xf32>
    %7 = arith.addf %3, %6 : vector<16x128xf32>
    %c0_6 = arith.constant 0 : index
    %c0_7 = arith.constant 0 : index
    %8 = vector.load %arg14[%c0_6, %c0_7] : memref<16x128xf32, #tpu.memory_space<vmem>>, vector<16x128xf32>
    tpu.vector_store %arg14[%c0_6, %c0_7], %7 {strides = array<i32>} : memref<16x128xf32, #tpu.memory_space<vmem>>, vector<16x128xf32>,
    %c0_i32_8 = arith.constant 0 : i32
    %9 = arith.cmpi eq, %arg1, %c0_i32_8 : i32
    %10 = arith.extui %9 : i1 to i32
    %c0_i32_9 = arith.constant 0 : i32
    %11 = arith.cmpi ne, %10, %c0_i32_9 : i32
    scf.if %11 {
      %c0_10 = arith.constant 0 : index
      %c0_11 = arith.constant 0 : index
      %12 = vector.load %arg14[%c0_10, %c0_11] : memref<16x128xf32, #tpu.memory_space<vmem>>, vector<16x128xf32>
      %c0_12 = arith.constant 0 : index
      %c0_13 = arith.constant 0 : index
      %13 = vector.load %arg4[%c0_12, %c0_13] : memref<1x128xf32, #tpu.memory_space<vmem>>, vector<1x128xf32>
      %14 = vector.broadcast %13 : vector<1x128xf32> to vector<16x128xf32>
      %15 = arith.addf %12, %14 : vector<16x128xf32>
      %cst_14 = arith.constant 0.000000e+00 : f32
      %16 = vector.broadcast %cst_14 : f32 to vector<16x128xf32>
      %17 = arith.maximumf %15, %16 : vector<16x128xf32>
      %18 = arith.truncf %17 : vector<16x128xf32> to vector<16x128xbf16>
      %c0_15 = arith.constant 0 : index
      %c0_16 = arith.constant 0 : index
      %19 = vector.load %arg5[%c0_15, %c0_16] : memref<128x128xbf16, #tpu.memory_space<vmem>>, vector<128x128xbf16>
      %cst_17 = arith.constant dense<0.000000e+00> : vector<16x128xf32>
      %20 = tpu.matmul %18, %19, %cst_17 {dimension_numbers = #tpu.dot_dimension_numbers<[1], [0], [0], [1], [0, 0, 1, 1], [], []>} : vector<16x128xbf16>, vector<128x128xbf16>, vector<16x128xf32> -> vector<16x128xf32>
      %c0_18 = arith.constant 0 : index
      %c0_19 = arith.constant 0 : index
      %21 = vector.load %arg6[%c0_18, %c0_19] : memref<1x128xf32, #tpu.memory_space<vmem>>, vector<1x128xf32>
      %22 = vector.broadcast %21 : vector<1x128xf32> to vector<16x128xf32>
      %23 = arith.addf %20, %22 : vector<16x128xf32>
      %cst_20 = arith.constant 0.000000e+00 : f32
      %24 = vector.broadcast %cst_20 : f32 to vector<16x128xf32>
      %25 = arith.maximumf %23, %24 : vector<16x128xf32>
      %26 = arith.truncf %25 : vector<16x128xf32> to vector<16x128xbf16>
      %c0_21 = arith.constant 0 : index
      %c0_22 = arith.constant 0 : index
      %27 = vector.load %arg7[%c0_21, %c0_22] : memref<128x128xbf16, #tpu.memory_space<vmem>>, vector<128x128xbf16>
      %cst_23 = arith.constant dense<0.000000e+00> : vector<16x128xf32>
      %28 = tpu.matmul %26, %27, %cst_23 {dimension_numbers = #tpu.dot_dimension_numbers<[1], [0], [0], [1], [0, 0, 1, 1], [], []>} : vector<16x128xbf16>, vector<128x128xbf16>, vector<16x128xf32> -> vector<16x128xf32>
      %c0_24 = arith.constant 0 : index
      %c0_25 = arith.constant 0 : index
      %29 = vector.load %arg8[%c0_24, %c0_25] : memref<1x128xf32, #tpu.memory_space<vmem>>, vector<1x128xf32>
      %30 = vector.broadcast %29 : vector<1x128xf32> to vector<16x128xf32>
      %31 = arith.addf %28, %30 : vector<16x128xf32>
      %cst_26 = arith.constant 0.000000e+00 : f32
      %32 = vector.broadcast %cst_26 : f32 to vector<16x128xf32>
      %33 = arith.maximumf %31, %32 : vector<16x128xf32>
      %34 = arith.truncf %33 : vector<16x128xf32> to vector<16x128xbf16>
      %c0_27 = arith.constant 0 : index
      %c0_28 = arith.constant 0 : index
      %35 = vector.load %arg9[%c0_27, %c0_28] : memref<128x128xbf16, #tpu.memory_space<vmem>>, vector<128x128xbf16>
      %cst_29 = arith.constant dense<0.000000e+00> : vector<16x128xf32>
      %36 = tpu.matmul %34, %35, %cst_29 {dimension_numbers = #tpu.dot_dimension_numbers<[1], [0], [0], [1], [0, 0, 1, 1], [], []>} : vector<16x128xbf16>, vector<128x128xbf16>, vector<16x128xf32> -> vector<16x128xf32>
      %c0_30 = arith.constant 0 : index
      %c0_31 = arith.constant 0 : index
      %37 = vector.load %arg10[%c0_30, %c0_31] : memref<1x128xf32, #tpu.memory_space<vmem>>, vector<1x128xf32>
      %38 = vector.broadcast %37 : vector<1x128xf32> to vector<16x128xf32>
      %39 = arith.addf %36, %38 : vector<16x128xf32>
      %cst_32 = arith.constant 0.000000e+00 : f32
      %40 = vector.broadcast %cst_32 : f32 to vector<16x128xf32>
      %41 = arith.maximumf %39, %40 : vector<16x128xf32>
      %42 = arith.truncf %41 : vector<16x128xf32> to vector<16x128xbf16>
      %c0_33 = arith.constant 0 : index
      %c0_34 = arith.constant 0 : index
      %43 = vector.load %arg11[%c0_33, %c0_34] : memref<128x128xbf16, #tpu.memory_space<vmem>>, vector<128x128xbf16>
      %cst_35 = arith.constant dense<0.000000e+00> : vector<16x128xf32>
      %44 = tpu.matmul %42, %43, %cst_35 {dimension_numbers = #tpu.dot_dimension_numbers<[1], [0], [0], [1], [0, 0, 1, 1], [], []>} : vector<16x128xbf16>, vector<128x128xbf16>, vector<16x128xf32> -> vector<16x128xf32>
      %c0_36 = arith.constant 0 : index
      %c0_37 = arith.constant 0 : index
      %45 = vector.load %arg12[%c0_36, %c0_37] : memref<1x128xf32, #tpu.memory_space<vmem>>, vector<1x128xf32>
      %46 = vector.broadcast %45 : vector<1x128xf32> to vector<16x128xf32>
      %47 = arith.addf %44, %46 : vector<16x128xf32>
      %48 = tpu.iota {dimensions = array<i32: 1>} : vector<16x128xi32>
      %c4_i32 = arith.constant 4 : i32
      %49 = vector.broadcast %c4_i32 : i32 to vector<16x128xi32>
      %50 = arith.cmpi sge, %48, %49 : vector<16x128xi32>
      %c34_i32 = arith.constant 34 : i32
      %51 = vector.broadcast %c34_i32 : i32 to vector<16x128xi32>
      %52 = arith.cmpi slt, %48, %51 : vector<16x128xi32>
      %53 = arith.andi %50, %52 : vector<16x128xi1>
      %cst_38 = arith.constant 0xFF800000 : f32
      %54 = vector.broadcast %cst_38 : f32 to vector<16x128xf32>
      %55 = arith.select %53, %47, %54 : vector<16x128xi1>, vector<16x128xf32>
      %cst_39 = arith.constant dense<0xFF800000> : vector<16xf32>
      %56 = vector.multi_reduction <maximumf>, %55, %cst_39 [1] : vector<16x128xf32> to vector<16xf32>
      %57 = vector.shape_cast %56 : vector<16xf32> to vector<16x1xf32>
      %58 = vector.broadcast %57 : vector<16x1xf32> to vector<16x128xf32>
      %59 = arith.cmpf oeq, %55, %58 : vector<16x128xf32>
      %c128_i32 = arith.constant 128 : i32
      %60 = vector.broadcast %c128_i32 : i32 to vector<16x128xi32>
      %61 = arith.select %59, %48, %60 : vector<16x128xi1>, vector<16x128xi32>
      %cst_40 = arith.constant dense<2147483647> : vector<16xi32>
      %62 = vector.multi_reduction <minsi>, %61, %cst_40 [1] : vector<16x128xi32> to vector<16xi32>
      %63 = vector.shape_cast %62 : vector<16xi32> to vector<16x1xi32>
      %c4_i32_41 = arith.constant 4 : i32
      %64 = vector.broadcast %c4_i32_41 : i32 to vector<16x1xi32>
      %65 = arith.subi %63, %64 : vector<16x1xi32>
      %c1_i32 = arith.constant 1 : i32
      %66 = vector.broadcast %c1_i32 : i32 to vector<16x1xi32>
      %67 = arith.addi %65, %66 : vector<16x1xi32>
      %68 = arith.sitofp %67 : vector<16x1xi32> to vector<16x1xf32>
      %c34_i32_42 = arith.constant 34 : i32
      %69 = vector.broadcast %c34_i32_42 : i32 to vector<16x128xi32>
      %70 = arith.cmpi eq, %48, %69 : vector<16x128xi32>
      %71 = vector.shape_cast %68 : vector<16x1xf32> to vector<16x1xf32>
      %72 = vector.broadcast %71 : vector<16x1xf32> to vector<16x128xf32>
      %73 = arith.select %70, %72, %47 : vector<16x128xi1>, vector<16x128xf32>
      %c0_43 = arith.constant 0 : index
      %c0_44 = arith.constant 0 : index
      %74 = vector.load %arg13[%c0_43, %c0_44] : memref<16x128xf32, #tpu.memory_space<vmem>>, vector<16x128xf32>
      tpu.vector_store %arg13[%c0_43, %c0_44], %73 {strides = array<i32>} : memref<16x128xf32, #tpu.memory_space<vmem>>, vector<16x128xf32>,
    } else {
    }
    return
  }
  func.func @transform_0(%arg0: i32, %arg1: i32) -> (i32, i32) {
    %c0_i32 = arith.constant 0 : i32
    return %arg0, %arg1 : i32, i32
  }
  func.func @transform_1(%arg0: i32, %arg1: i32) -> (i32, i32) {
    %c0_i32 = arith.constant 0 : i32
    %c0_i32_0 = arith.constant 0 : i32
    return %arg1, %c0_i32 : i32, i32
  }
  func.func @transform_2(%arg0: i32, %arg1: i32) -> (i32, i32) {
    %c0_i32 = arith.constant 0 : i32
    %c0_i32_0 = arith.constant 0 : i32
    %c0_i32_1 = arith.constant 0 : i32
    return %c0_i32, %c0_i32_0 : i32, i32
  }
  func.func @transform_3(%arg0: i32, %arg1: i32) -> (i32, i32) {
    %c0_i32 = arith.constant 0 : i32
    %c0_i32_0 = arith.constant 0 : i32
    %c0_i32_1 = arith.constant 0 : i32
    return %c0_i32, %c0_i32_0 : i32, i32
  }
  func.func @transform_4(%arg0: i32, %arg1: i32) -> (i32, i32) {
    %c0_i32 = arith.constant 0 : i32
    %c0_i32_0 = arith.constant 0 : i32
    %c0_i32_1 = arith.constant 0 : i32
    return %c0_i32, %c0_i32_0 : i32, i32
  }
  func.func @transform_5(%arg0: i32, %arg1: i32) -> (i32, i32) {
    %c0_i32 = arith.constant 0 : i32
    %c0_i32_0 = arith.constant 0 : i32
    %c0_i32_1 = arith.constant 0 : i32
    return %c0_i32, %c0_i32_0 : i32, i32
  }
  func.func @transform_6(%arg0: i32, %arg1: i32) -> (i32, i32) {
    %c0_i32 = arith.constant 0 : i32
    %c0_i32_0 = arith.constant 0 : i32
    %c0_i32_1 = arith.constant 0 : i32
    return %c0_i32, %c0_i32_0 : i32, i32
  }
  func.func @transform_7(%arg0: i32, %arg1: i32) -> (i32, i32) {
    %c0_i32 = arith.constant 0 : i32
    %c0_i32_0 = arith.constant 0 : i32
    %c0_i32_1 = arith.constant 0 : i32
    return %c0_i32, %c0_i32_0 : i32, i32
  }
  func.func @transform_8(%arg0: i32, %arg1: i32) -> (i32, i32) {
    %c0_i32 = arith.constant 0 : i32
    %c0_i32_0 = arith.constant 0 : i32
    %c0_i32_1 = arith.constant 0 : i32
    return %c0_i32, %c0_i32_0 : i32, i32
  }
  func.func @transform_9(%arg0: i32, %arg1: i32) -> (i32, i32) {
    %c0_i32 = arith.constant 0 : i32
    %c0_i32_0 = arith.constant 0 : i32
    %c0_i32_1 = arith.constant 0 : i32
    return %c0_i32, %c0_i32_0 : i32, i32
  }
  func.func @transform_10(%arg0: i32, %arg1: i32) -> (i32, i32) {
    %c0_i32 = arith.constant 0 : i32
    %c0_i32_0 = arith.constant 0 : i32
    %c0_i32_1 = arith.constant 0 : i32
    return %c0_i32, %c0_i32_0 : i32, i32
  }
  func.func @transform_11(%arg0: i32, %arg1: i32) -> (i32, i32) {
    %c0_i32 = arith.constant 0 : i32
    %c0_i32_0 = arith.constant 0 : i32
    return %arg0, %c0_i32 : i32, i32
  }
}

module attributes {stable_mosaic.version = 11 : i64} {
  func.func @_bezier_mlp_kernel(%arg0: i32, %arg1: i32, %arg2: memref<16x256xbf16, #tpu.memory_space<vmem>>, %arg3: memref<256x128xbf16, #tpu.memory_space<vmem>>, %arg4: memref<1x128xf32, #tpu.memory_space<vmem>>, %arg5: memref<128x128xbf16, #tpu.memory_space<vmem>>, %arg6: memref<1x128xf32, #tpu.memory_space<vmem>>, %arg7: memref<128x128xbf16, #tpu.memory_space<vmem>>, %arg8: memref<1x128xf32, #tpu.memory_space<vmem>>, %arg9: memref<128x128xbf16, #tpu.memory_space<vmem>>, %arg10: memref<1x128xf32, #tpu.memory_space<vmem>>, %arg11: memref<128x128xbf16, #tpu.memory_space<vmem>>, %arg12: memref<1x128xf32, #tpu.memory_space<vmem>>, %arg13: memref<16x128xf32, #tpu.memory_space<vmem>>, %arg14: memref<16x128xf32, #tpu.memory_space<vmem>>) attributes {dimension_semantics = [#tpu.dimension_semantics<parallel>, #tpu.dimension_semantics<arbitrary>], iteration_bounds = array<i64: 1, 1>, scalar_prefetch = 0 : i64, scratch_operands = 1 : i64, tpu.core_type = #tpu.core_type<tc>, window_params = [{transform_indices = @transform_0, window_bounds = array<i64: 16, 256>}, {transform_indices = @transform_1, window_bounds = array<i64: 256, 128>}, {pipeline_mode = #tpu.pipeline_mode<synchronous>, transform_indices = @transform_2, window_bounds = array<i64: 1, 128>}, {pipeline_mode = #tpu.pipeline_mode<synchronous>, transform_indices = @transform_3, window_bounds = array<i64: 128, 128>}, {pipeline_mode = #tpu.pipeline_mode<synchronous>, transform_indices = @transform_4, window_bounds = array<i64: 1, 128>}, {pipeline_mode = #tpu.pipeline_mode<synchronous>, transform_indices = @transform_5, window_bounds = array<i64: 128, 128>}, {pipeline_mode = #tpu.pipeline_mode<synchronous>, transform_indices = @transform_6, window_bounds = array<i64: 1, 128>}, {pipeline_mode = #tpu.pipeline_mode<synchronous>, transform_indices = @transform_7, window_bounds = array<i64: 128, 128>}, {pipeline_mode = #tpu.pipeline_mode<synchronous>, transform_indices = @transform_8, window_bounds = array<i64: 1, 128>}, {pipeline_mode = #tpu.pipeline_mode<synchronous>, transform_indices = @transform_9, window_bounds = array<i64: 128, 128>}, {pipeline_mode = #tpu.pipeline_mode<synchronous>, transform_indices = @transform_10, window_bounds = array<i64: 1, 128>}, {transform_indices = @transform_11, window_bounds = array<i64: 16, 128>}]} {
    %c0_i32 = arith.constant 0 : i32
    %0 = arith.cmpi eq, %arg1, %c0_i32 : i32
    %1 = arith.extui %0 : i1 to i32
    %c0_i32_0 = arith.constant 0 : i32
    %2 = arith.cmpi ne, %1, %c0_i32_0 : i32
    scf.if %2 {
      %cst_10 = arith.constant 0.000000e+00 : f32
      %12 = vector.broadcast %cst_10 : f32 to vector<16x128xf32>
      %c0_11 = arith.constant 0 : index
      %c0_12 = arith.constant 0 : index
      %13 = vector.load %arg14[%c0_11, %c0_12] : memref<16x128xf32, #tpu.memory_space<vmem>>, vector<16x128xf32>
      tpu.vector_store %arg14[%c0_11, %c0_12], %12 {strides = array<i32>} : memref<16x128xf32, #tpu.memory_space<vmem>>, vector<16x128xf32>,
    } else {
    }
    %c0 = arith.constant 0 : index
    %c0_1 = arith.constant 0 : index
    %3 = vector.load %arg14[%c0, %c0_1] : memref<16x128xf32, #tpu.memory_space<vmem>>, vector<16x128xf32>
    %c0_2 = arith.constant 0 : index
    %c0_3 = arith.constant 0 : index
    %4 = vector.load %arg2[%c0_2, %c0_3] : memref<16x256xbf16, #tpu.memory_space<vmem>>, vector<16x256xbf16>
    %c0_4 = arith.constant 0 : index
    %c0_5 = arith.constant 0 : index
    %5 = vector.load %arg3[%c0_4, %c0_5] : memref<256x128xbf16, #tpu.memory_space<vmem>>, vector<256x128xbf16>
    %cst = arith.constant dense<0.000000e+00> : vector<16x128xf32>
    %6 = tpu.matmul %4, %5, %cst {dimension_numbers = #tpu.dot_dimension_numbers<[1], [0], [0], [1], [0, 0, 1, 1], [], []>} : vector<16x256xbf16>, vector<256x128xbf16>, vector<16x128xf32> -> vector<16x128xf32>
    %7 = arith.addf %3, %6 : vector<16x128xf32>
    %c0_6 = arith.constant 0 : index
    %c0_7 = arith.constant 0 : index
    %8 = vector.load %arg14[%c0_6, %c0_7] : memref<16x128xf32, #tpu.memory_space<vmem>>, vector<16x128xf32>
    tpu.vector_store %arg14[%c0_6, %c0_7], %7 {strides = array<i32>} : memref<16x128xf32, #tpu.memory_space<vmem>>, vector<16x128xf32>,
    %c0_i32_8 = arith.constant 0 : i32
    %9 = arith.cmpi eq, %arg1, %c0_i32_8 : i32
    %10 = arith.extui %9 : i1 to i32
    %c0_i32_9 = arith.constant 0 : i32
    %11 = arith.cmpi ne, %10, %c0_i32_9 : i32
    scf.if %11 {
      %c0_10 = arith.constant 0 : index
      %c0_11 = arith.constant 0 : index
      %12 = vector.load %arg14[%c0_10, %c0_11] : memref<16x128xf32, #tpu.memory_space<vmem>>, vector<16x128xf32>
      %c0_12 = arith.constant 0 : index
      %c0_13 = arith.constant 0 : index
      %13 = vector.load %arg4[%c0_12, %c0_13] : memref<1x128xf32, #tpu.memory_space<vmem>>, vector<1x128xf32>
      %14 = vector.broadcast %13 : vector<1x128xf32> to vector<16x128xf32>
      %15 = arith.addf %12, %14 : vector<16x128xf32>
      %cst_14 = arith.constant 0.000000e+00 : f32
      %16 = vector.broadcast %cst_14 : f32 to vector<16x128xf32>
      %17 = arith.maximumf %15, %16 : vector<16x128xf32>
      %18 = arith.truncf %17 : vector<16x128xf32> to vector<16x128xbf16>
      %c0_15 = arith.constant 0 : index
      %c0_16 = arith.constant 0 : index
      %19 = vector.load %arg5[%c0_15, %c0_16] : memref<128x128xbf16, #tpu.memory_space<vmem>>, vector<128x128xbf16>
      %cst_17 = arith.constant dense<0.000000e+00> : vector<16x128xf32>
      %20 = tpu.matmul %18, %19, %cst_17 {dimension_numbers = #tpu.dot_dimension_numbers<[1], [0], [0], [1], [0, 0, 1, 1], [], []>} : vector<16x128xbf16>, vector<128x128xbf16>, vector<16x128xf32> -> vector<16x128xf32>
      %c0_18 = arith.constant 0 : index
      %c0_19 = arith.constant 0 : index
      %21 = vector.load %arg6[%c0_18, %c0_19] : memref<1x128xf32, #tpu.memory_space<vmem>>, vector<1x128xf32>
      %22 = vector.broadcast %21 : vector<1x128xf32> to vector<16x128xf32>
      %23 = arith.addf %20, %22 : vector<16x128xf32>
      %cst_20 = arith.constant 0.000000e+00 : f32
      %24 = vector.broadcast %cst_20 : f32 to vector<16x128xf32>
      %25 = arith.maximumf %23, %24 : vector<16x128xf32>
      %26 = arith.truncf %25 : vector<16x128xf32> to vector<16x128xbf16>
      %c0_21 = arith.constant 0 : index
      %c0_22 = arith.constant 0 : index
      %27 = vector.load %arg7[%c0_21, %c0_22] : memref<128x128xbf16, #tpu.memory_space<vmem>>, vector<128x128xbf16>
      %cst_23 = arith.constant dense<0.000000e+00> : vector<16x128xf32>
      %28 = tpu.matmul %26, %27, %cst_23 {dimension_numbers = #tpu.dot_dimension_numbers<[1], [0], [0], [1], [0, 0, 1, 1], [], []>} : vector<16x128xbf16>, vector<128x128xbf16>, vector<16x128xf32> -> vector<16x128xf32>
      %c0_24 = arith.constant 0 : index
      %c0_25 = arith.constant 0 : index
      %29 = vector.load %arg8[%c0_24, %c0_25] : memref<1x128xf32, #tpu.memory_space<vmem>>, vector<1x128xf32>
      %30 = vector.broadcast %29 : vector<1x128xf32> to vector<16x128xf32>
      %31 = arith.addf %28, %30 : vector<16x128xf32>
      %cst_26 = arith.constant 0.000000e+00 : f32
      %32 = vector.broadcast %cst_26 : f32 to vector<16x128xf32>
      %33 = arith.maximumf %31, %32 : vector<16x128xf32>
      %34 = arith.truncf %33 : vector<16x128xf32> to vector<16x128xbf16>
      %c0_27 = arith.constant 0 : index
      %c0_28 = arith.constant 0 : index
      %35 = vector.load %arg9[%c0_27, %c0_28] : memref<128x128xbf16, #tpu.memory_space<vmem>>, vector<128x128xbf16>
      %cst_29 = arith.constant dense<0.000000e+00> : vector<16x128xf32>
      %36 = tpu.matmul %34, %35, %cst_29 {dimension_numbers = #tpu.dot_dimension_numbers<[1], [0], [0], [1], [0, 0, 1, 1], [], []>} : vector<16x128xbf16>, vector<128x128xbf16>, vector<16x128xf32> -> vector<16x128xf32>
      %c0_30 = arith.constant 0 : index
      %c0_31 = arith.constant 0 : index
      %37 = vector.load %arg10[%c0_30, %c0_31] : memref<1x128xf32, #tpu.memory_space<vmem>>, vector<1x128xf32>
      %38 = vector.broadcast %37 : vector<1x128xf32> to vector<16x128xf32>
      %39 = arith.addf %36, %38 : vector<16x128xf32>
      %cst_32 = arith.constant 0.000000e+00 : f32
      %40 = vector.broadcast %cst_32 : f32 to vector<16x128xf32>
      %41 = arith.maximumf %39, %40 : vector<16x128xf32>
      %42 = arith.truncf %41 : vector<16x128xf32> to vector<16x128xbf16>
      %c0_33 = arith.constant 0 : index
      %c0_34 = arith.constant 0 : index
      %43 = vector.load %arg11[%c0_33, %c0_34] : memref<128x128xbf16, #tpu.memory_space<vmem>>, vector<128x128xbf16>
      %cst_35 = arith.constant dense<0.000000e+00> : vector<16x128xf32>
      %44 = tpu.matmul %42, %43, %cst_35 {dimension_numbers = #tpu.dot_dimension_numbers<[1], [0], [0], [1], [0, 0, 1, 1], [], []>} : vector<16x128xbf16>, vector<128x128xbf16>, vector<16x128xf32> -> vector<16x128xf32>
      %c0_36 = arith.constant 0 : index
      %c0_37 = arith.constant 0 : index
      %45 = vector.load %arg12[%c0_36, %c0_37] : memref<1x128xf32, #tpu.memory_space<vmem>>, vector<1x128xf32>
      %46 = vector.broadcast %45 : vector<1x128xf32> to vector<16x128xf32>
      %47 = arith.addf %44, %46 : vector<16x128xf32>
      %48 = tpu.iota {dimensions = array<i32: 1>} : vector<16x128xi32>
      %c4_i32 = arith.constant 4 : i32
      %49 = vector.broadcast %c4_i32 : i32 to vector<16x128xi32>
      %50 = arith.cmpi sge, %48, %49 : vector<16x128xi32>
      %c34_i32 = arith.constant 34 : i32
      %51 = vector.broadcast %c34_i32 : i32 to vector<16x128xi32>
      %52 = arith.cmpi slt, %48, %51 : vector<16x128xi32>
      %53 = arith.andi %50, %52 : vector<16x128xi1>
      %cst_38 = arith.constant 0xFF800000 : f32
      %54 = vector.broadcast %cst_38 : f32 to vector<16x128xf32>
      %55 = arith.select %53, %47, %54 : vector<16x128xi1>, vector<16x128xf32>
      %cst_39 = arith.constant dense<0xFF800000> : vector<16xf32>
      %56 = vector.multi_reduction <maximumf>, %55, %cst_39 [1] : vector<16x128xf32> to vector<16xf32>
      %57 = vector.shape_cast %56 : vector<16xf32> to vector<16x1xf32>
      %58 = vector.broadcast %57 : vector<16x1xf32> to vector<16x128xf32>
      %59 = arith.cmpf oeq, %55, %58 : vector<16x128xf32>
      %c128_i32 = arith.constant 128 : i32
      %60 = vector.broadcast %c128_i32 : i32 to vector<16x128xi32>
      %61 = arith.select %59, %48, %60 : vector<16x128xi1>, vector<16x128xi32>
      %cst_40 = arith.constant dense<2147483647> : vector<16xi32>
      %62 = vector.multi_reduction <minsi>, %61, %cst_40 [1] : vector<16x128xi32> to vector<16xi32>
      %63 = vector.shape_cast %62 : vector<16xi32> to vector<16x1xi32>
      %c4_i32_41 = arith.constant 4 : i32
      %64 = vector.broadcast %c4_i32_41 : i32 to vector<16x1xi32>
      %65 = arith.subi %63, %64 : vector<16x1xi32>
      %c1_i32 = arith.constant 1 : i32
      %66 = vector.broadcast %c1_i32 : i32 to vector<16x1xi32>
      %67 = arith.addi %65, %66 : vector<16x1xi32>
      %68 = arith.sitofp %67 : vector<16x1xi32> to vector<16x1xf32>
      %c34_i32_42 = arith.constant 34 : i32
      %69 = vector.broadcast %c34_i32_42 : i32 to vector<16x128xi32>
      %70 = arith.cmpi eq, %48, %69 : vector<16x128xi32>
      %71 = vector.shape_cast %68 : vector<16x1xf32> to vector<16x1xf32>
      %72 = vector.broadcast %71 : vector<16x1xf32> to vector<16x128xf32>
      %73 = arith.select %70, %72, %47 : vector<16x128xi1>, vector<16x128xf32>
      %c0_43 = arith.constant 0 : index
      %c0_44 = arith.constant 0 : index
      %74 = vector.load %arg13[%c0_43, %c0_44] : memref<16x128xf32, #tpu.memory_space<vmem>>, vector<16x128xf32>
      tpu.vector_store %arg13[%c0_43, %c0_44], %73 {strides = array<i32>} : memref<16x128xf32, #tpu.memory_space<vmem>>, vector<16x128xf32>,
    } else {
    }
    return
  }
  func.func @transform_0(%arg0: i32, %arg1: i32) -> (i32, i32) {
    %c0_i32 = arith.constant 0 : i32
    return %arg0, %arg1 : i32, i32
  }
  func.func @transform_1(%arg0: i32, %arg1: i32) -> (i32, i32) {
    %c0_i32 = arith.constant 0 : i32
    %c0_i32_0 = arith.constant 0 : i32
    return %arg1, %c0_i32 : i32, i32
  }
  func.func @transform_2(%arg0: i32, %arg1: i32) -> (i32, i32) {
    %c0_i32 = arith.constant 0 : i32
    %c0_i32_0 = arith.constant 0 : i32
    %c0_i32_1 = arith.constant 0 : i32
    return %c0_i32, %c0_i32_0 : i32, i32
  }
  func.func @transform_3(%arg0: i32, %arg1: i32) -> (i32, i32) {
    %c0_i32 = arith.constant 0 : i32
    %c0_i32_0 = arith.constant 0 : i32
    %c0_i32_1 = arith.constant 0 : i32
    return %c0_i32, %c0_i32_0 : i32, i32
  }
  func.func @transform_4(%arg0: i32, %arg1: i32) -> (i32, i32) {
    %c0_i32 = arith.constant 0 : i32
    %c0_i32_0 = arith.constant 0 : i32
    %c0_i32_1 = arith.constant 0 : i32
    return %c0_i32, %c0_i32_0 : i32, i32
  }
  func.func @transform_5(%arg0: i32, %arg1: i32) -> (i32, i32) {
    %c0_i32 = arith.constant 0 : i32
    %c0_i32_0 = arith.constant 0 : i32
    %c0_i32_1 = arith.constant 0 : i32
    return %c0_i32, %c0_i32_0 : i32, i32
  }
  func.func @transform_6(%arg0: i32, %arg1: i32) -> (i32, i32) {
    %c0_i32 = arith.constant 0 : i32
    %c0_i32_0 = arith.constant 0 : i32
    %c0_i32_1 = arith.constant 0 : i32
    return %c0_i32, %c0_i32_0 : i32, i32
  }
  func.func @transform_7(%arg0: i32, %arg1: i32) -> (i32, i32) {
    %c0_i32 = arith.constant 0 : i32
    %c0_i32_0 = arith.constant 0 : i32
    %c0_i32_1 = arith.constant 0 : i32
    return %c0_i32, %c0_i32_0 : i32, i32
  }
  func.func @transform_8(%arg0: i32, %arg1: i32) -> (i32, i32) {
    %c0_i32 = arith.constant 0 : i32
    %c0_i32_0 = arith.constant 0 : i32
    %c0_i32_1 = arith.constant 0 : i32
    return %c0_i32, %c0_i32_0 : i32, i32
  }
  func.func @transform_9(%arg0: i32, %arg1: i32) -> (i32, i32) {
    %c0_i32 = arith.constant 0 : i32
    %c0_i32_0 = arith.constant 0 : i32
    %c0_i32_1 = arith.constant 0 : i32
    return %c0_i32, %c0_i32_0 : i32, i32
  }
  func.func @transform_10(%arg0: i32, %arg1: i32) -> (i32, i32) {
    %c0_i32 = arith.constant 0 : i32
    %c0_i32_0 = arith.constant 0 : i32
    %c0_i32_1 = arith.constant 0 : i32
    return %c0_i32, %c0_i32_0 : i32, i32
  }
  func.func @transform_11(%arg0: i32, %arg1: i32) -> (i32, i32) {
    %c0_i32 = arith.constant 0 : i32
    %c0_i32_0 = arith.constant 0 : i32
    return %arg0, %c0_i32 : i32, i32
  }
}

</mosaic_0001>

<bundles_post_ra>
// kernel: tpu_custom_call.1
= control target key start
LH: loop header
LB: loop body
LE: loop exit
PB: predicated region body
PF: predicated region fallthrough
CT: control target
= control target key end

     0   :  { %16 = vsyncpa [#allocation4], 0  ;;  %s1526_s0 = inlined_call_operand.hbm [shape: bf16[16,256], index: 0, kind: input, shape index: {}]   ;;  %s1527_s1 = inlined_call_operand.hbm [shape: bf16[256,128], index: 1, kind: input, shape index: {}]   ;;  %s1528_s2 = inlined_call_operand.vmem [shape: f32[1,128], index: 2, kind: input, shape index: {}]   ;;  %s1529_s3 = inlined_call_operand.hbm [shape: bf16[128,128], index: 3, kind: input, shape index: {}]   ;;  %s1530_s4 = inlined_call_operand.vmem [shape: f32[1,128], index: 4, kind: input, shape index: {}]   ;;  %s1531_s5 = inlined_call_operand.hbm [shape: bf16[128,128], index: 5, kind: input, shape index: {}]   ;;  %s1532_s6 = inlined_call_operand.vmem [shape: f32[1,128], index: 6, kind: input, shape index: {}]   ;;  %s1533_s7 = inlined_call_operand.hbm [shape: bf16[128,128], index: 7, kind: input, shape index: {}]   ;;  %s1534_s8 = inlined_call_operand.vmem [shape: f32[1,128], index: 8, kind: input, shape index: {}]   ;;  %s1535_s9 = inlined_call_operand.hbm [shape: bf16[128,128], index: 9, kind: input, shape index: {}]   ;;  %s1536_s10 = inlined_call_operand.vmem [shape: f32[1,128], index: 10, kind: input, shape index: {}]   ;;  %s1537_s11 = inlined_call_operand.hbm [shape: f32[16,128], index: 11, kind: output, shape index: {}]  }
   0x1   :  { %17 = vsyncpa [#allocation7], 0 }
   0x2   :  { %18 = vsyncpa [#allocation10], 0 }
   0x3   :  { %19 = vsyncpa [#allocation13], 0 }
   0x4   :  { %20 = vsyncpa [#allocation5], 0  ;;  %s1286_s17 = smov [#allocation6]   ;;  %s1122_s21 = scalar_lea.hbm %s1527_s1, 2048 }
   0x5   :  { %s38_s18 = sshll.u32 %s1286_s17, 4  ;;  %p1123_p0 = scmp.ne.s32.totalorder %s1527_s1, %s1122_s21  ;;  %s39_s18 = int_to_ptr.vmem [resolvable:$true] %s38_s18 }
   0x6   :  { %p1126_p1 = scmp.lt.u32.totalorder %s1122_s21, %s1527_s1 }
   0x8   :  { %p1128_p2 = pnand %p1126_p1, %p1123_p0 }
   0xa   :  { %1131 = shalt.err (!%p1128_p2)
}
   0xb   :  { %s1132_s26 = scalar_lea.vmem %s39_s18, 2048  ;;  %p1137_p4 = scmp.lt.s32.totalorder %s39_s18, %s39_s18 }
   0xc   :  { %p1133_p3 = scmp.ne.s32.totalorder %s39_s18, %s1132_s26  ;;  %p1138_p5 = scmp.lt.s32.totalorder %s1132_s26, %s1132_s26 }
   0xe   :  { %p1139_p6 = por %p1138_p5, %p1137_p4 }
  0x10   :  { %p1140_p7 = pnand %p1139_p6, %p1133_p3 }
  0x12   :  { %1143 = shalt.err (!%p1140_p7)
}
  0x13   :  { %s1287_s27 = smov 64   ;;  %s1288_s28 = smov 4  }
  0x14   :  { %44 = dma.hbm_to_vmem [thread:$0]  %s1527_s1, 2048, %s39_s18, [#allocation7], %s1287_s27, %s1287_s27, %s1288_s28  }
  0x15   :  { %s1289_s12 = smov [#allocation9]   ;;  %s1290_s14 = smov [#allocation3]  }
  0x16   :  { %s66_s13 = sshll.u32 %s1289_s12, 4  ;;  %s26_s15 = sshll.u32 %s1290_s14, 4  ;;  %s67_s13 = int_to_ptr.vmem [resolvable:$true] %s66_s13  ;;  %s27_s15 = int_to_ptr.vmem [resolvable:$true] %s26_s15 }
  0x17   :  { %s1144_s19 = scalar_lea.hbm %s1531_s5, 1024 }
  0x18   :  { %p1145_p8 = scmp.ne.s32.totalorder %s1531_s5, %s1144_s19  ;;  %p1148_p9 = scmp.lt.u32.totalorder %s1144_s19, %s1531_s5 }
  0x1a   :  { %p1150_p10 = pnand %p1148_p9, %p1145_p8 }
  0x1c   :  { %1153 = shalt.err (!%p1150_p10)
}
  0x1d   :  { %s1154_s1 = scalar_lea.vmem %s67_s13, 1024  ;;  %p1159_p12 = scmp.lt.s32.totalorder %s67_s13, %s67_s13 }
  0x1e   :  { %p1155_p11 = scmp.ne.s32.totalorder %s67_s13, %s1154_s1  ;;  %p1160_p13 = scmp.lt.s32.totalorder %s1154_s1, %s1154_s1 }
  0x20   :  { %p1161_p0 = por %p1160_p13, %p1159_p12 }
  0x22   :  { %p1162_p1 = pnand %p1161_p0, %p1155_p11 }
  0x24   :  { %1165 = shalt.err (!%p1162_p1)
}
  0x25   :  { %72 = dma.hbm_to_vmem [thread:$0]  %s1531_s5, 1024, %s67_s13, [#allocation10], %s1287_s27, %s1287_s27, %s1288_s28  }
  0x26   :  { %s1166_s29 = scalar_lea.hbm %s1526_s0, 256 }
  0x27   :  { %p1167_p2 = scmp.ne.s32.totalorder %s1526_s0, %s1166_s29  ;;  %p1170_p3 = scmp.lt.u32.totalorder %s1166_s29, %s1526_s0 }
  0x29   :  { %p1172_p4 = pnand %p1170_p3, %p1167_p2 }
  0x2b   :  { %1175 = shalt.err (!%p1172_p4)
}
  0x2c   :  { %s1176_s17 = scalar_lea.vmem %s27_s15, 256  ;;  %p1181_p6 = scmp.lt.s32.totalorder %s27_s15, %s27_s15 }
  0x2d   :  { %p1177_p5 = scmp.ne.s32.totalorder %s27_s15, %s1176_s17  ;;  %p1182_p7 = scmp.lt.s32.totalorder %s1176_s17, %s1176_s17 }
  0x2f   :  { %p1183_p8 = por %p1182_p7, %p1181_p6 }
  0x31   :  { %p1184_p9 = pnand %p1183_p8, %p1177_p5 }
  0x33   :  { %1187 = shalt.err (!%p1184_p9)
}
  0x34   :  { %s1291_s5 = smov 128   ;;  %s1292_s13 = smov 8  }
  0x35   :  { %32 = dma.hbm_to_vmem [thread:$0]  %s1526_s0, 256, %s27_s15, [#allocation4], %s1291_s5, %s1291_s5, %s1292_s13  }
  0x36   :  { %s1293_s21 = smov [#allocation8]   ;;  %s1294_s23 = smov [#allocation11]  }
  0x37   :  { %s52_s22 = sshll.u32 %s1293_s21, 4  ;;  %s80_s1 = sshll.u32 %s1294_s23, 4  ;;  %s53_s22 = int_to_ptr.vmem [resolvable:$true] %s52_s22  ;;  %s81_s1 = int_to_ptr.vmem [resolvable:$true] %s80_s1 }
  0x38   :  { %s1188_s25 = scalar_lea.hbm %s1529_s3, 1024 }
  0x39   :  { %p1189_p10 = scmp.ne.s32.totalorder %s1529_s3, %s1188_s25  ;;  %p1192_p11 = scmp.lt.u32.totalorder %s1188_s25, %s1529_s3 }
  0x3b   :  { %p1194_p12 = pnand %p1192_p11, %p1189_p10 }
  0x3d   :  { %1197 = shalt.err (!%p1194_p12)
}
  0x3e   :  { %s1198_s0 = scalar_lea.vmem %s53_s22, 1024  ;;  %p1203_p0 = scmp.lt.s32.totalorder %s53_s22, %s53_s22 }
  0x3f   :  { %p1199_p13 = scmp.ne.s32.totalorder %s53_s22, %s1198_s0  ;;  %p1204_p1 = scmp.lt.s32.totalorder %s1198_s0, %s1198_s0 }
  0x41   :  { %p1205_p2 = por %p1204_p1, %p1203_p0 }
  0x43   :  { %p1206_p3 = pnand %p1205_p2, %p1199_p13 }
  0x45   :  { %1209 = shalt.err (!%p1206_p3)
}
  0x46   :  { %58 = dma.hbm_to_vmem [thread:$0]  %s1529_s3, 1024, %s53_s22, [#allocation7], %s1287_s27, %s1287_s27, %s1288_s28  }
  0x47   :  { %s1210_s19 = scalar_lea.hbm %s1533_s7, 1024 }
  0x48   :  { %p1211_p4 = scmp.ne.s32.totalorder %s1533_s7, %s1210_s19  ;;  %p1214_p5 = scmp.lt.u32.totalorder %s1210_s19, %s1533_s7 }
  0x4a   :  { %p1216_p6 = pnand %p1214_p5, %p1211_p4 }
  0x4c   :  { %1219 = shalt.err (!%p1216_p6)
}
  0x4d   :  { %s1220_s24 = scalar_lea.vmem %s81_s1, 1024  ;;  %p1225_p8 = scmp.lt.s32.totalorder %s81_s1, %s81_s1 }
  0x4e   :  { %p1221_p7 = scmp.ne.s32.totalorder %s81_s1, %s1220_s24  ;;  %p1226_p9 = scmp.lt.s32.totalorder %s1220_s24, %s1220_s24 }
  0x50   :  { %p1227_p10 = por %p1226_p9, %p1225_p8 }
  0x52   :  { %p1228_p11 = pnand %p1227_p10, %p1221_p7 }
  0x54   :  { %1231 = shalt.err (!%p1228_p11)
}
  0x55   :  { %86 = dma.hbm_to_vmem [thread:$0]  %s1533_s7, 1024, %s81_s1, [#allocation10], %s1287_s27, %s1287_s27, %s1288_s28  }
  0x56   :  { %s1295_s25 = smov [#allocation12]   ;;  %s1232_s12 = scalar_lea.hbm %s1535_s9, 1024 }
  0x57   :  { %s94_s26 = sshll.u32 %s1295_s25, 4  ;;  %p1233_p12 = scmp.ne.s32.totalorder %s1535_s9, %s1232_s12  ;;  %s95_s26 = int_to_ptr.vmem [resolvable:$true] %s94_s26 }
  0x58   :  { %p1236_p13 = scmp.lt.u32.totalorder %s1232_s12, %s1535_s9 }
  0x5a   :  { %p1238_p0 = pnand %p1236_p13, %p1233_p12 }
  0x5c   :  { %1241 = shalt.err (!%p1238_p0)
}
  0x5d   :  { %s1242_s17 = scalar_lea.vmem %s95_s26, 1024  ;;  %p1247_p2 = scmp.lt.s32.totalorder %s95_s26, %s95_s26 }
  0x5e   :  { %p1243_p1 = scmp.ne.s32.totalorder %s95_s26, %s1242_s17  ;;  %p1248_p3 = scmp.lt.s32.totalorder %s1242_s17, %s1242_s17 }
  0x60   :  { %p1249_p4 = por %p1248_p3, %p1247_p2 }
  0x62   :  { %p1250_p5 = pnand %p1249_p4, %p1243_p1 }
  0x64   :  { %1253 = shalt.err (!%p1250_p5)
}
  0x65   :  { %100 = dma.hbm_to_vmem [thread:$0]  %s1535_s9, 1024, %s95_s26, [#allocation13], %s1287_s27, %s1287_s27, %s1288_s28  }
  0x66   :  { %1276 = dma.done.wait [#allocation4], 256  }
  0x67   :  { %1277 = vsyncadd [#allocation4], 4294967040 }
  0x68   :  { %1278 = dma.done.wait [#allocation7], 3072  }
  0x69   :  { %1279 = vsyncadd [#allocation7], 4294964224 }
  0x6a   :  { %1280 = dma.done.wait [#allocation10], 2048  }
  0x6b   :  { %1281 = vsyncadd [#allocation10], 4294965248 }
  0x6c   :  { %1282 = dma.done.wait [#allocation13], 1024  }
  0x6d   :  { %1283 = vsyncadd [#allocation13], 4294966272  ;;  %v1296_v0 = vmov 0.0   ;;  %v1071_v1 = vld [vmem:[#allocation6 + $0x40] sm:$0xff]   ;;  %v1073_v3 = vld [vmem:[#allocation6 + $0x48] sm:$0xff]   ;;  %vm1297_vm0 = vmmov 0  }
  0x6e   :  { %978 = vmatprep.subr.bf16.mxu1 %v1296_v0  ;;  %v1072_v2 = vld [vmem:[#allocation6] sm:$0xff]   ;;  %920 = vmatprep.subr.bf16.mxu0 %v1071_v1  ;;  %v1074_v4 = vld [vmem:[#allocation6 + $0x8] sm:$0xff]   ;;  %v1075_v5 = vld [vmem:[#allocation6 + $0x50] sm:$0xff]  }
  0x6f   :  { %921 = vmatpush3.bf16.msra.mxu0 %v1072_v2  ;;  %v1076_v6 = vld [vmem:[#allocation6 + $0x10] sm:$0xff]   ;;  %v1077_v7 = vld [vmem:[#allocation6 + $0x58] sm:$0xff]   ;;  %v1079_v9 = vld [vmem:[#allocation6 + $0x60] sm:$0xff]   ;;  %994 = vmatprep.mubr.msk.bf16.mxu1 %vm1297_vm0, %v1296_v0 }
  0x70   :  { %922 = vmatprep.subr.bf16.mxu0 %v1073_v3  ;;  %v1078_v8 = vld [vmem:[#allocation6 + $0x18] sm:$0xff]   ;;  %v1080_v10 = vld [vmem:[#allocation6 + $0x20] sm:$0xff]   ;;  %v1081_v11 = vld [vmem:[#allocation6 + $0x68] sm:$0xff]  }
  0x71   :  { %v1082_v12 = vld [vmem:[#allocation6 + $0x28] sm:$0xff]   ;;  %v1089_v13 = vld [vmem:[#allocation3 + $0x4] ss:$8 sps:$4 sm:$0xff]   ;;  %v1090_v14 = vld [vmem:[#allocation8] sm:$0xff]  }
  0x72   :  { %v1083_v15 = vld [vmem:[#allocation6 + $0x70] sm:$0xff]   ;;  %302 = vmatprep.mubr.bf16.mxu0 %v1089_v13  ;;  %979 = vmatpush3.bf16.msra.mxu1 %v1090_v14  ;;  %v1091_v16 = vld [vmem:[#allocation8 + $0x8] sm:$0xff]   ;;  %v1085_v18 = vld [vmem:[#allocation6 + $0x78] sm:$0xff]  }
  0x73   :  { %923 = vmatpush3.bf16.msra.mxu0 %v1074_v4  ;;  %v1084_v17 = vld [vmem:[#allocation6 + $0x30] sm:$0xff]   ;;  %980 = vmatprep.subr.bf16.mxu1 %v1296_v0  ;;  %v1086_v20 = vld [vmem:[#allocation6 + $0x38] sm:$0xff]   ;;  %v1094_v23 = vld [vmem:[#allocation8 + $0x20] sm:$0xff]  }
  0x74   :  { %924 = vmatprep.subr.bf16.mxu0 %v1075_v5  ;;  %v1092_v19 = vld [vmem:[#allocation8 + $0x10] sm:$0xff]   ;;  %v1093_v21 = vld [vmem:[#allocation8 + $0x18] sm:$0xff]   ;;  %v1095_v24 = vld [vmem:[#allocation8 + $0x28] sm:$0xff]  }
  0x75   :  { %v1087_v22 = vld [vmem:[#allocation3] ss:$8 sps:$4 sm:$0xff]   ;;  %v1098_v27 = vld [vmem:[#allocation9] sm:$0xff]   ;;  %v1099_v28 = vld [vmem:[#allocation9 + $0x8] sm:$0xff]  }
  0x76   :  { %981 = vmatpush3.bf16.msra.mxu1 %v1091_v16  ;;  %v1096_v25 = vld [vmem:[#allocation8 + $0x30] sm:$0xff]   ;;  %v1097_v26 = vld [vmem:[#allocation8 + $0x38] sm:$0xff]   ;;  %v1102_v31 = vld [vmem:[#allocation9 + $0x20] sm:$0xff]  }
  0x77   :  { %925 = vmatpush3.bf16.msra.mxu0 %v1076_v6  ;;  %982 = vmatprep.subr.bf16.mxu1 %v1296_v0  ;;  %v1100_v29 = vld [vmem:[#allocation9 + $0x10] sm:$0xff]   ;;  %v1101_v30 = vld [vmem:[#allocation9 + $0x18] sm:$0xff]   ;;  %v1103_v32 = vld [vmem:[#allocation9 + $0x28] sm:$0xff]  }
  0x78   :  { %926 = vmatprep.subr.bf16.mxu0 %v1077_v7  ;;  %v881_v35 = vld [vmem:[%s1528_s2] ss:$0 sm:$0xff]  ;;  %v1105_v46 = vld [vmem:[#allocation9 + $0x38] sm:$0xff]   ;;  %v1106_v47 = vld [vmem:[#allocation11] sm:$0xff]  }
  0x79   :  { %v1104_v45 = vld [vmem:[#allocation9 + $0x30] sm:$0xff]   ;;  %v1107_v48 = vld [vmem:[#allocation11 + $0x8] sm:$0xff]   ;;  %v1109_v50 = vld [vmem:[#allocation11 + $0x18] sm:$0xff]  }
  0x7a   :  { %983 = vmatpush3.bf16.msra.mxu1 %v1092_v19  ;;  %v1108_v49 = vld [vmem:[#allocation11 + $0x10] sm:$0xff]   ;;  %v1110_v51 = vld [vmem:[#allocation11 + $0x20] sm:$0xff]   ;;  %v1111_v52 = vld [vmem:[#allocation11 + $0x28] sm:$0xff]  }
  0x7b   :  { %927 = vmatpush3.bf16.msra.mxu0 %v1078_v8  ;;  %984 = vmatprep.subr.bf16.mxu1 %v1296_v0  ;;  %v882_v53 = vld [vmem:[%s1530_s4] ss:$0 sm:$0xff]  ;;  %v1113_v1 = vld [vmem:[#allocation11 + $0x38] sm:$0xff]   ;;  %v1114_v2 = vld [vmem:[#allocation12] sm:$0xff]  }
  0x7c   :  { %928 = vmatprep.subr.bf16.mxu0 %v1079_v9  ;;  %v1112_v63 = vld [vmem:[#allocation11 + $0x30] sm:$0xff]   ;;  %v1115_v3 = vld [vmem:[#allocation12 + $0x8] sm:$0xff]   ;;  %v1117_v5 = vld [vmem:[#allocation12 + $0x18] sm:$0xff]  }
  0x7d   :  { %v1116_v4 = vld [vmem:[#allocation12 + $0x10] sm:$0xff]   ;;  %v1118_v6 = vld [vmem:[#allocation12 + $0x20] sm:$0xff]   ;;  %v1119_v7 = vld [vmem:[#allocation12 + $0x28] sm:$0xff]  }
  0x7e   :  { %985 = vmatpush3.bf16.msra.mxu1 %v1093_v21  ;;  %v891_v8 = vld [vmem:[%s1532_s6] ss:$0 sm:$0xff]  ;;  %v1121_v19 = vld [vmem:[#allocation12 + $0x38] sm:$0xff]  }
  0x7f   :  { %929 = vmatpush3.bf16.msra.mxu0 %v1080_v10  ;;  %986 = vmatprep.subr.bf16.mxu1 %v1296_v0 }
  0x80   :  { %930 = vmatprep.subr.bf16.mxu0 %v1081_v11 }
  0x82   :  { %987 = vmatpush3.bf16.msra.mxu1 %v1094_v23 }
  0x83   :  { %931 = vmatpush3.bf16.msra.mxu0 %v1082_v12  ;;  %988 = vmatprep.subr.bf16.mxu1 %v1296_v0 }
  0x84   :  { %932 = vmatprep.subr.bf16.mxu0 %v1083_v15 }
  0x86   :  { %989 = vmatpush3.bf16.msra.mxu1 %v1095_v24 }
  0x87   :  { %933 = vmatpush3.bf16.msra.mxu0 %v1084_v17  ;;  %990 = vmatprep.subr.bf16.mxu1 %v1296_v0 }
  0x88   :  { %934 = vmatprep.subr.bf16.mxu0 %v1085_v18  ;;  %v1120_v18 = vld [vmem:[#allocation12 + $0x30] sm:$0xff]  }
  0x8a   :  { %991 = vmatpush3.bf16.msra.mxu1 %v1096_v25 }
  0x8b   :  { %935 = vmatpush3.bf16.msra.mxu0 %v1086_v20  ;;  %992 = vmatprep.subr.bf16.mxu1 %v1296_v0  ;;  %v900_v20 = vld [vmem:[%s1534_s8] ss:$0 sm:$0xff]  ;;  %s1298_s8 = smov [#allocation14]  }
  0x8c   :  { %998 = vmatprep.subr.bf16.mxu0 %v1296_v0 }
  0x8e   :  { %303 = vmatmul.mubr.bf16.vlgmr.msra.gmra.mrb[0].mxu0 %v1087_v22  ;;  %993 = vmatpush3.bf16.msra.mxu1 %v1097_v26 }
  0x8f   :  { %1014 = vmatprep.mubr.msk.bf16.mxu0 %vm1297_vm0, %v1296_v0  ;;  %1018 = vmatprep.subr.bf16.mxu1 %v1296_v0 }
  0x90   :  { %999 = vmatpush3.bf16.msra.mxu0 %v1098_v27 }
  0x91   :  { %1000 = vmatprep.subr.bf16.mxu0 %v1296_v0 }
  0x94   :  { %1001 = vmatpush3.bf16.msra.mxu0 %v1099_v28 }
  0x95   :  { %1002 = vmatprep.subr.bf16.mxu0 %v1296_v0 }
  0x98   :  { %1003 = vmatpush3.bf16.msra.mxu0 %v1100_v29 }
  0x99   :  { %1004 = vmatprep.subr.bf16.mxu0 %v1296_v0 }
  0x9c   :  { %1005 = vmatpush3.bf16.msra.mxu0 %v1101_v30  ;;  %v789_v30 = vlaneseq }
  0x9d   :  { %1006 = vmatprep.subr.bf16.mxu0 %v1296_v0 }
  0xa0   :  { %1007 = vmatpush3.bf16.msra.mxu0 %v1102_v31  ;;  %v1501_v31 = vand.u32 127, %v789_v30 }
  0xa1   :  { %1008 = vmatprep.subr.bf16.mxu0 %v1296_v0 }
  0xa2   :  { %vm791_vm1 = vcmp.ge.s32.totalorder %v1501_v31, 4  ;;  %vm792_vm2 = vcmp.lt.s32.totalorder %v1501_v31, 34  ;;  %vm838_vm8 = vcmp.eq.s32.totalorder %v1501_v31, 34 }
  0xa3   :  { %vm793_vm3 = vmand %vm791_vm1, %vm792_vm2 }
  0xa4   :  { %1009 = vmatpush3.bf16.msra.mxu0 %v1103_v32 }
  0xa5   :  { %1010 = vmatprep.subr.bf16.mxu0 %v1296_v0 }
  0xa8   :  { %1011 = vmatpush3.bf16.msra.mxu0 %v1104_v45 }
  0xa9   :  { %1012 = vmatprep.subr.bf16.mxu0 %v1296_v0 }
  0xac   :  { %1013 = vmatpush3.bf16.msra.mxu0 %v1105_v46 }
  0xad   :  { %1038 = vmatprep.subr.bf16.mxu0 %v1296_v0 }
 0x161   :  { %v936_v33 = vpop.f32.mrb[0].mxu0 }
 0x162   :  { %v937_v34 = vpop.f32.mrb[1].mxu0 }
 0x163   :  { %v938_v36 = vadd.f32 %v937_v34, %v936_v33  ;;  %v939_v37 = vpop.f32.mrb[2].mxu0 }
 0x164   :  { %v940_v38 = vpop.f32.mrb[3].mxu0 }
 0x165   :  { %v327_v39 = vadd.f32 %v938_v36, %v881_v35  ;;  %v941_v40 = vadd.f32 %v940_v38, %v939_v37 }
 0x167   :  { %v328_v41 = vadd.f32 %v941_v40, %v881_v35  ;;  %v329_v42 = vmax.f32 %v327_v39, 0.0 }
 0x169   :  { %v330_v43 = vmax.f32 %v328_v41, 0.0 }
 0x16b   :  { %v331_v44 = vpack.c.bf16 %v330_v43, %v329_v42 }
 0x16d   :  { %995 = vmatmul.mubr.bf16.vlgmr.msra.gmra.mrb[0].mxu1 %v331_v44 }
 0x16e   :  { %1034 = vmatprep.mubr.msk.bf16.mxu1 %vm1297_vm0, %v1296_v0  ;;  %1019 = vmatpush3.bf16.msra.mxu1 %v1106_v47 }
 0x16f   :  { %1020 = vmatprep.subr.bf16.mxu1 %v1296_v0 }
 0x172   :  { %1021 = vmatpush3.bf16.msra.mxu1 %v1107_v48 }
 0x173   :  { %1022 = vmatprep.subr.bf16.mxu1 %v1296_v0 }
 0x176   :  { %1023 = vmatpush3.bf16.msra.mxu1 %v1108_v49 }
 0x177   :  { %1024 = vmatprep.subr.bf16.mxu1 %v1296_v0 }
 0x17a   :  { %1025 = vmatpush3.bf16.msra.mxu1 %v1109_v50 }
 0x17b   :  { %1026 = vmatprep.subr.bf16.mxu1 %v1296_v0 }
 0x17e   :  { %1027 = vmatpush3.bf16.msra.mxu1 %v1110_v51 }
 0x17f   :  { %1028 = vmatprep.subr.bf16.mxu1 %v1296_v0 }
 0x182   :  { %1029 = vmatpush3.bf16.msra.mxu1 %v1111_v52 }
 0x183   :  { %1030 = vmatprep.subr.bf16.mxu1 %v1296_v0 }
 0x186   :  { %1031 = vmatpush3.bf16.msra.mxu1 %v1112_v63 }
 0x187   :  { %1032 = vmatprep.subr.bf16.mxu1 %v1296_v0 }
 0x18a   :  { %1033 = vmatpush3.bf16.msra.mxu1 %v1113_v1 }
 0x240   :  { %v437_v54 = vpop.f32.mrb[0].mxu1 }
 0x241   :  { %v438_v55 = vadd.f32 %v882_v53, %v437_v54  ;;  %v996_v56 = vpop.f32.mrb[1].mxu1 }
 0x242   :  { %v440_v57 = vpop.f32.mrb[2].mxu1 }
 0x243   :  { %v441_v58 = vadd.f32 %v882_v53, %v440_v57  ;;  %v997_v59 = vpop.f32.mrb[3].mxu1  ;;  %v444_v60 = vmax.f32 %v438_v55, 0.0 }
 0x245   :  { %v445_v61 = vmax.f32 %v441_v58, 0.0 }
 0x247   :  { %v446_v62 = vpack.c.bf16 %v445_v61, %v444_v60 }
 0x249   :  { %1015 = vmatmul.mubr.bf16.vlgmr.msra.gmra.mrb[4].mxu0 %v446_v62 }
 0x24a   :  { %1054 = vmatprep.mubr.msk.bf16.mxu0 %vm1297_vm0, %v1296_v0  ;;  %1039 = vmatpush3.bf16.msra.mxu0 %v1114_v2 }
 0x24b   :  { %1040 = vmatprep.subr.bf16.mxu0 %v1296_v0 }
 0x24e   :  { %1041 = vmatpush3.bf16.msra.mxu0 %v1115_v3 }
 0x24f   :  { %1042 = vmatprep.subr.bf16.mxu0 %v1296_v0 }
 0x252   :  { %1043 = vmatpush3.bf16.msra.mxu0 %v1116_v4 }
 0x253   :  { %1044 = vmatprep.subr.bf16.mxu0 %v1296_v0 }
 0x256   :  { %1045 = vmatpush3.bf16.msra.mxu0 %v1117_v5 }
 0x257   :  { %1046 = vmatprep.subr.bf16.mxu0 %v1296_v0 }
 0x25a   :  { %1047 = vmatpush3.bf16.msra.mxu0 %v1118_v6 }
 0x25b   :  { %1048 = vmatprep.subr.bf16.mxu0 %v1296_v0 }
 0x25e   :  { %1049 = vmatpush3.bf16.msra.mxu0 %v1119_v7 }
 0x25f   :  { %1050 = vmatprep.subr.bf16.mxu0 %v1296_v0 }
 0x262   :  { %1051 = vmatpush3.bf16.msra.mxu0 %v1120_v18 }
 0x263   :  { %1052 = vmatprep.subr.bf16.mxu0 %v1296_v0  ;;  %v909_v0 = vld [vmem:[%s1536_s10] ss:$0 sm:$0xff]  ;;  %s848_s10 = sshll.u32 %s1298_s8, 4  ;;  %s849_s10 = int_to_ptr.vmem [resolvable:$true] %s848_s10 }
 0x264   :  { %s1254_s18 = scalar_lea.vmem %s849_s10, 256  ;;  %p1259_p7 = scmp.lt.s32.totalorder %s849_s10, %s849_s10 }
 0x265   :  { %p1255_p6 = scmp.ne.s32.totalorder %s849_s10, %s1254_s18  ;;  %p1260_p8 = scmp.lt.s32.totalorder %s1254_s18, %s1254_s18 }
 0x266   :  { %1053 = vmatpush3.bf16.msra.mxu0 %v1121_v19 }
 0x267   :  { %p1261_p9 = por %p1260_p8, %p1259_p7 }
 0x269   :  { %p1262_p10 = pnand %p1261_p9, %p1255_p6 }
 0x31c   :  { %v552_v9 = vpop.f32.mrb[4].mxu0 }
 0x31d   :  { %v553_v10 = vadd.f32 %v891_v8, %v552_v9  ;;  %v1016_v11 = vpop.f32.mrb[5].mxu0 }
 0x31e   :  { %v555_v12 = vpop.f32.mrb[6].mxu0 }
 0x31f   :  { %v556_v13 = vadd.f32 %v891_v8, %v555_v12  ;;  %v1017_v14 = vpop.f32.mrb[7].mxu0  ;;  %v559_v15 = vmax.f32 %v553_v10, 0.0 }
 0x321   :  { %v560_v16 = vmax.f32 %v556_v13, 0.0 }
 0x323   :  { %v561_v17 = vpack.c.bf16 %v560_v16, %v559_v15 }
 0x325   :  { %1035 = vmatmul.mubr.bf16.vlgmr.msra.gmra.mrb[4].mxu1 %v561_v17 }
 0x3f8   :  { %v667_v21 = vpop.f32.mrb[4].mxu1 }
 0x3f9   :  { %v668_v22 = vadd.f32 %v900_v20, %v667_v21  ;;  %v1036_v23 = vpop.f32.mrb[5].mxu1 }
 0x3fa   :  { %v670_v24 = vpop.f32.mrb[6].mxu1 }
 0x3fb   :  { %v671_v25 = vadd.f32 %v900_v20, %v670_v24  ;;  %v1037_v26 = vpop.f32.mrb[7].mxu1  ;;  %v674_v27 = vmax.f32 %v668_v22, 0.0 }
 0x3fd   :  { %v675_v28 = vmax.f32 %v671_v25, 0.0 }
 0x3ff   :  { %v676_v29 = vpack.c.bf16 %v675_v28, %v674_v27 }
 0x401   :  { %1055 = vmatmul.mubr.bf16.vlgmr.msra.gmra.mrb[8].mxu0 %v676_v29 }
 0x4d4   :  { %v782_v32 = vpop.f32.mrb[8].mxu0 }
 0x4d5   :  { %v783_v33 = vadd.f32 %v909_v0, %v782_v32  ;;  %v1056_v34 = vpop.f32.mrb[9].mxu0 }
 0x4d6   :  { %v785_v35 = vpop.f32.mrb[10].mxu0 }
 0x4d7   :  { %v786_v36 = vadd.f32 %v909_v0, %v785_v35  ;;  %v1057_v37 = vpop.f32.mrb[11].mxu0  ;;  %v794_v38 = vsel %vm793_vm3, %v783_v33, -inf }
 0x4d8   :  { %796 = vmax.xlane.f32.xlu0 %v794_v38 }
 0x4d9   :  { %v795_v39 = vsel %vm793_vm3, %v786_v36, -inf }
 0x4dc   :  { %798 = vmax.xlane.f32.xlu0 %v795_v39 }
 0x565   :  { %v797_v40 = vpop.xlane.xlu0 %796 }
 0x566   :  { %vm800_vm4 = vcmp.eq.f32.partialorder %v794_v38, %v797_v40 }
 0x567   :  { %v802_v41 = vsel %vm800_vm4, %v1501_v31, 128 }
 0x568   :  { %v805_v42 = vshra.s32 %v802_v41, 16  ;;  %v804_v48 = vand.u32 65535, %v802_v41 }
 0x569   :  { %v799_v43 = vpop.xlane.xlu0 %798 }
 0x56a   :  { %vm801_vm5 = vcmp.eq.f32.partialorder %v795_v39, %v799_v43  ;;  %v807_v44 = vcvt.s32.f32 %v805_v42  ;;  %v806_v51 = vcvt.s32.f32 %v804_v48 }
 0x56b   :  { %v803_v45 = vsel %vm801_vm5, %v1501_v31, 128 }
 0x56c   :  { %808 = vmin.xlane.f32.xlu1 %v807_v44  ;;  %v819_v46 = vshra.s32 %v803_v45, 16  ;;  %v818_v49 = vand.u32 65535, %v803_v45 }
 0x56e   :  { %v821_v47 = vcvt.s32.f32 %v819_v46  ;;  %v820_v54 = vcvt.s32.f32 %v818_v49 }
 0x570   :  { %822 = vmin.xlane.f32.xlu1 %v821_v47 }
 0x5f9   :  { %v809_v50 = vpop.xlane.xlu1 %808 }
 0x5fa   :  { %vm810_vm6 = vcmp.eq.f32.partialorder %v807_v44, %v809_v50  ;;  %v815_v56 = vcvt.f32.s32 %v809_v50 }
 0x5fb   :  { %v811_v52 = vsel %vm810_vm6, %v806_v51, inf }
 0x5fc   :  { %812 = vmin.xlane.f32.xlu0 %v811_v52  ;;  %v816_v58 = vshll.u32 %v815_v56, 16 }
 0x5fd   :  { %v823_v53 = vpop.xlane.xlu1 %822 }
 0x5fe   :  { %vm824_vm7 = vcmp.eq.f32.partialorder %v821_v47, %v823_v53  ;;  %v829_v59 = vcvt.f32.s32 %v823_v53 }
 0x5ff   :  { %v825_v55 = vsel %vm824_vm7, %v820_v54, inf }
 0x600   :  { %826 = vmin.xlane.f32.xlu1 %v825_v55  ;;  %v830_v63 = vshll.u32 %v829_v59, 16 }
 0x689   :  { %v813_v57 = vpop.xlane.xlu0 %812 }
 0x68a   :  { %v814_v60 = vcvt.f32.s32 %v813_v57 }
 0x68c   :  { %v817_v61 = vadd.s32 %v816_v58, %v814_v60 }
 0x68d   :  { %v827_v62 = vpop.xlane.xlu1 %826 }
 0x68e   :  { %v918_v1 = vadd.s32 4294967292, %v817_v61  ;;  %v828_v2 = vcvt.f32.s32 %v827_v62 }
 0x690   :  { %v834_v3 = vadd.s32 1, %v918_v1  ;;  %v831_v4 = vadd.s32 %v830_v63, %v828_v2 }
 0x692   :  { %v836_v5 = vcvt.s32.f32 %v834_v3  ;;  %v919_v6 = vadd.s32 4294967292, %v831_v4 }
 0x694   :  { %v835_v7 = vadd.s32 1, %v919_v6  ;;  %v839_v8 = vsel %vm838_vm8, %v836_v5, %v783_v33 }
 0x695   :  { %841 = vst [vmem:[#allocation14] sm:$0xff] %v839_v8 }
 0x696   :  { %v837_v9 = vcvt.s32.f32 %v835_v7 }
 0x698   :  { %v840_v10 = vsel %vm838_vm8, %v837_v9, %v786_v36 }
 0x699   :  { %842 = vst [vmem:[#allocation14 + $0x8] sm:$0xff] %v840_v10 }
 0x69a   :  { %1265 = shalt.err (!%p1262_p10)
}
 0x69b   :  { %s1266_s22 = scalar_lea.hbm %s1537_s11, 256 }
 0x69c   :  { %p1267_p11 = scmp.ne.s32.totalorder %s1537_s11, %s1266_s22  ;;  %p1270_p12 = scmp.lt.u32.totalorder %s1266_s22, %s1537_s11 }
 0x69e   :  { %p1272_p13 = pnand %p1270_p12, %p1267_p11 }
 0x6a0   :  { %1275 = shalt.err (!%p1272_p13)
}
 0x6a1   :  { %854 = dma.vmem_to_hbm [thread:$0]  %s849_s10, 256, %s1537_s11, [#allocation5], %s1291_s5, %s1291_s5, %s1292_s13  }
 0x6a2   :  { %1284 = dma.done.wait [#allocation5], 256  }
 0x6a3   :  { %1285 = vsyncadd [#allocation5], 4294967040 }
 0x6a4   :  { %858 = vsyncpa [#allocation4], 1 }
 0x6a5   :  { %859 = vsyncpa [#allocation7], 1 }
 0x6a6   :  { %860 = vsyncpa [#allocation10], 1 }
 0x6a7   :  { %861 = vsyncpa [#allocation13], 1 }
 0x6a8   :  { %862 = vsyncpa [#allocation5], 1 }

// kernel: tpu_custom_call.1
= control target key start
LH: loop header
LB: loop body
LE: loop exit
PB: predicated region body
PF: predicated region fallthrough
CT: control target
= control target key end

     0   :  { %16 = vsyncpa [#allocation4], 0  ;;  %s1526_s0 = inlined_call_operand.hbm [shape: bf16[16,256], index: 0, kind: input, shape index: {}]   ;;  %s1527_s1 = inlined_call_operand.hbm [shape: bf16[256,128], index: 1, kind: input, shape index: {}]   ;;  %s1528_s2 = inlined_call_operand.vmem [shape: f32[1,128], index: 2, kind: input, shape index: {}]   ;;  %s1529_s3 = inlined_call_operand.hbm [shape: bf16[128,128], index: 3, kind: input, shape index: {}]   ;;  %s1530_s4 = inlined_call_operand.vmem [shape: f32[1,128], index: 4, kind: input, shape index: {}]   ;;  %s1531_s5 = inlined_call_operand.hbm [shape: bf16[128,128], index: 5, kind: input, shape index: {}]   ;;  %s1532_s6 = inlined_call_operand.vmem [shape: f32[1,128], index: 6, kind: input, shape index: {}]   ;;  %s1533_s7 = inlined_call_operand.hbm [shape: bf16[128,128], index: 7, kind: input, shape index: {}]   ;;  %s1534_s8 = inlined_call_operand.vmem [shape: f32[1,128], index: 8, kind: input, shape index: {}]   ;;  %s1535_s9 = inlined_call_operand.hbm [shape: bf16[128,128], index: 9, kind: input, shape index: {}]   ;;  %s1536_s10 = inlined_call_operand.vmem [shape: f32[1,128], index: 10, kind: input, shape index: {}]   ;;  %s1537_s11 = inlined_call_operand.hbm [shape: f32[16,128], index: 11, kind: output, shape index: {}]  }
   0x1   :  { %17 = vsyncpa [#allocation7], 0 }
   0x2   :  { %18 = vsyncpa [#allocation10], 0 }
   0x3   :  { %19 = vsyncpa [#allocation13], 0 }
   0x4   :  { %20 = vsyncpa [#allocation5], 0  ;;  %s1286_s17 = smov [#allocation6]   ;;  %s1122_s21 = scalar_lea.hbm %s1527_s1, 2048 }
   0x5   :  { %s38_s18 = sshll.u32 %s1286_s17, 4  ;;  %p1123_p0 = scmp.ne.s32.totalorder %s1527_s1, %s1122_s21  ;;  %s39_s18 = int_to_ptr.vmem [resolvable:$true] %s38_s18 }
   0x6   :  { %p1126_p1 = scmp.lt.u32.totalorder %s1122_s21, %s1527_s1 }
   0x8   :  { %p1128_p2 = pnand %p1126_p1, %p1123_p0 }
   0xa   :  { %1131 = shalt.err (!%p1128_p2)
}
   0xb   :  { %s1132_s26 = scalar_lea.vmem %s39_s18, 2048  ;;  %p1137_p4 = scmp.lt.s32.totalorder %s39_s18, %s39_s18 }
   0xc   :  { %p1133_p3 = scmp.ne.s32.totalorder %s39_s18, %s1132_s26  ;;  %p1138_p5 = scmp.lt.s32.totalorder %s1132_s26, %s1132_s26 }
   0xe   :  { %p1139_p6 = por %p1138_p5, %p1137_p4 }
  0x10   :  { %p1140_p7 = pnand %p1139_p6, %p1133_p3 }
  0x12   :  { %1143 = shalt.err (!%p1140_p7)
}
  0x13   :  { %s1287_s27 = smov 64   ;;  %s1288_s28 = smov 4  }
  0x14   :  { %44 = dma.hbm_to_vmem [thread:$0]  %s1527_s1, 2048, %s39_s18, [#allocation7], %s1287_s27, %s1287_s27, %s1288_s28  }
  0x15   :  { %s1289_s12 = smov [#allocation9]   ;;  %s1290_s14 = smov [#allocation3]  }
  0x16   :  { %s66_s13 = sshll.u32 %s1289_s12, 4  ;;  %s26_s15 = sshll.u32 %s1290_s14, 4  ;;  %s67_s13 = int_to_ptr.vmem [resolvable:$true] %s66_s13  ;;  %s27_s15 = int_to_ptr.vmem [resolvable:$true] %s26_s15 }
  0x17   :  { %s1144_s19 = scalar_lea.hbm %s1531_s5, 1024 }
  0x18   :  { %p1145_p8 = scmp.ne.s32.totalorder %s1531_s5, %s1144_s19  ;;  %p1148_p9 = scmp.lt.u32.totalorder %s1144_s19, %s1531_s5 }
  0x1a   :  { %p1150_p10 = pnand %p1148_p9, %p1145_p8 }
  0x1c   :  { %1153 = shalt.err (!%p1150_p10)
}
  0x1d   :  { %s1154_s1 = scalar_lea.vmem %s67_s13, 1024  ;;  %p1159_p12 = scmp.lt.s32.totalorder %s67_s13, %s67_s13 }
  0x1e   :  { %p1155_p11 = scmp.ne.s32.totalorder %s67_s13, %s1154_s1  ;;  %p1160_p13 = scmp.lt.s32.totalorder %s1154_s1, %s1154_s1 }
  0x20   :  { %p1161_p0 = por %p1160_p13, %p1159_p12 }
  0x22   :  { %p1162_p1 = pnand %p1161_p0, %p1155_p11 }
  0x24   :  { %1165 = shalt.err (!%p1162_p1)
}
  0x25   :  { %72 = dma.hbm_to_vmem [thread:$0]  %s1531_s5, 1024, %s67_s13, [#allocation10], %s1287_s27, %s1287_s27, %s1288_s28  }
  0x26   :  { %s1166_s29 = scalar_lea.hbm %s1526_s0, 256 }
  0x27   :  { %p1167_p2 = scmp.ne.s32.totalorder %s1526_s0, %s1166_s29  ;;  %p1170_p3 = scmp.lt.u32.totalorder %s1166_s29, %s1526_s0 }
  0x29   :  { %p1172_p4 = pnand %p1170_p3, %p1167_p2 }
  0x2b   :  { %1175 = shalt.err (!%p1172_p4)
}
  0x2c   :  { %s1176_s17 = scalar_lea.vmem %s27_s15, 256  ;;  %p1181_p6 = scmp.lt.s32.totalorder %s27_s15, %s27_s15 }
  0x2d   :  { %p1177_p5 = scmp.ne.s32.totalorder %s27_s15, %s1176_s17  ;;  %p1182_p7 = scmp.lt.s32.totalorder %s1176_s17, %s1176_s17 }
  0x2f   :  { %p1183_p8 = por %p1182_p7, %p1181_p6 }
  0x31   :  { %p1184_p9 = pnand %p1183_p8, %p1177_p5 }
  0x33   :  { %1187 = shalt.err (!%p1184_p9)
}
  0x34   :  { %s1291_s5 = smov 128   ;;  %s1292_s13 = smov 8  }
  0x35   :  { %32 = dma.hbm_to_vmem [thread:$0]  %s1526_s0, 256, %s27_s15, [#allocation4], %s1291_s5, %s1291_s5, %s1292_s13  }
  0x36   :  { %s1293_s21 = smov [#allocation8]   ;;  %s1294_s23 = smov [#allocation11]  }
  0x37   :  { %s52_s22 = sshll.u32 %s1293_s21, 4  ;;  %s80_s1 = sshll.u32 %s1294_s23, 4  ;;  %s53_s22 = int_to_ptr.vmem [resolvable:$true] %s52_s22  ;;  %s81_s1 = int_to_ptr.vmem [resolvable:$true] %s80_s1 }
  0x38   :  { %s1188_s25 = scalar_lea.hbm %s1529_s3, 1024 }
  0x39   :  { %p1189_p10 = scmp.ne.s32.totalorder %s1529_s3, %s1188_s25  ;;  %p1192_p11 = scmp.lt.u32.totalorder %s1188_s25, %s1529_s3 }
  0x3b   :  { %p1194_p12 = pnand %p1192_p11, %p1189_p10 }
  0x3d   :  { %1197 = shalt.err (!%p1194_p12)
}
  0x3e   :  { %s1198_s0 = scalar_lea.vmem %s53_s22, 1024  ;;  %p1203_p0 = scmp.lt.s32.totalorder %s53_s22, %s53_s22 }
  0x3f   :  { %p1199_p13 = scmp.ne.s32.totalorder %s53_s22, %s1198_s0  ;;  %p1204_p1 = scmp.lt.s32.totalorder %s1198_s0, %s1198_s0 }
  0x41   :  { %p1205_p2 = por %p1204_p1, %p1203_p0 }
  0x43   :  { %p1206_p3 = pnand %p1205_p2, %p1199_p13 }
  0x45   :  { %1209 = shalt.err (!%p1206_p3)
}
  0x46   :  { %58 = dma.hbm_to_vmem [thread:$0]  %s1529_s3, 1024, %s53_s22, [#allocation7], %s1287_s27, %s1287_s27, %s1288_s28  }
  0x47   :  { %s1210_s19 = scalar_lea.hbm %s1533_s7, 1024 }
  0x48   :  { %p1211_p4 = scmp.ne.s32.totalorder %s1533_s7, %s1210_s19  ;;  %p1214_p5 = scmp.lt.u32.totalorder %s1210_s19, %s1533_s7 }
  0x4a   :  { %p1216_p6 = pnand %p1214_p5, %p1211_p4 }
  0x4c   :  { %1219 = shalt.err (!%p1216_p6)
}
  0x4d   :  { %s1220_s24 = scalar_lea.vmem %s81_s1, 1024  ;;  %p1225_p8 = scmp.lt.s32.totalorder %s81_s1, %s81_s1 }
  0x4e   :  { %p1221_p7 = scmp.ne.s32.totalorder %s81_s1, %s1220_s24  ;;  %p1226_p9 = scmp.lt.s32.totalorder %s1220_s24, %s1220_s24 }
  0x50   :  { %p1227_p10 = por %p1226_p9, %p1225_p8 }
  0x52   :  { %p1228_p11 = pnand %p1227_p10, %p1221_p7 }
  0x54   :  { %1231 = shalt.err (!%p1228_p11)
}
  0x55   :  { %86 = dma.hbm_to_vmem [thread:$0]  %s1533_s7, 1024, %s81_s1, [#allocation10], %s1287_s27, %s1287_s27, %s1288_s28  }
  0x56   :  { %s1295_s25 = smov [#allocation12]   ;;  %s1232_s12 = scalar_lea.hbm %s1535_s9, 1024 }
  0x57   :  { %s94_s26 = sshll.u32 %s1295_s25, 4  ;;  %p1233_p12 = scmp.ne.s32.totalorder %s1535_s9, %s1232_s12  ;;  %s95_s26 = int_to_ptr.vmem [resolvable:$true] %s94_s26 }
  0x58   :  { %p1236_p13 = scmp.lt.u32.totalorder %s1232_s12, %s1535_s9 }
  0x5a   :  { %p1238_p0 = pnand %p1236_p13, %p1233_p12 }
  0x5c   :  { %1241 = shalt.err (!%p1238_p0)
}
  0x5d   :  { %s1242_s17 = scalar_lea.vmem %s95_s26, 1024  ;;  %p1247_p2 = scmp.lt.s32.totalorder %s95_s26, %s95_s26 }
  0x5e   :  { %p1243_p1 = scmp.ne.s32.totalorder %s95_s26, %s1242_s17  ;;  %p1248_p3 = scmp.lt.s32.totalorder %s1242_s17, %s1242_s17 }
  0x60   :  { %p1249_p4 = por %p1248_p3, %p1247_p2 }
  0x62   :  { %p1250_p5 = pnand %p1249_p4, %p1243_p1 }
  0x64   :  { %1253 = shalt.err (!%p1250_p5)
}
  0x65   :  { %100 = dma.hbm_to_vmem [thread:$0]  %s1535_s9, 1024, %s95_s26, [#allocation13], %s1287_s27, %s1287_s27, %s1288_s28  }
  0x66   :  { %1276 = dma.done.wait [#allocation4], 256  }
  0x67   :  { %1277 = vsyncadd [#allocation4], 4294967040 }
  0x68   :  { %1278 = dma.done.wait [#allocation7], 3072  }
  0x69   :  { %1279 = vsyncadd [#allocation7], 4294964224 }
  0x6a   :  { %1280 = dma.done.wait [#allocation10], 2048  }
  0x6b   :  { %1281 = vsyncadd [#allocation10], 4294965248 }
  0x6c   :  { %1282 = dma.done.wait [#allocation13], 1024  }
  0x6d   :  { %1283 = vsyncadd [#allocation13], 4294966272  ;;  %v1296_v0 = vmov 0.0   ;;  %v1071_v1 = vld [vmem:[#allocation6 + $0x40] sm:$0xff]   ;;  %v1073_v3 = vld [vmem:[#allocation6 + $0x48] sm:$0xff]   ;;  %vm1297_vm0 = vmmov 0  }
  0x6e   :  { %978 = vmatprep.subr.bf16.mxu1 %v1296_v0  ;;  %v1072_v2 = vld [vmem:[#allocation6] sm:$0xff]   ;;  %920 = vmatprep.subr.bf16.mxu0 %v1071_v1  ;;  %v1074_v4 = vld [vmem:[#allocation6 + $0x8] sm:$0xff]   ;;  %v1075_v5 = vld [vmem:[#allocation6 + $0x50] sm:$0xff]  }
  0x6f   :  { %921 = vmatpush3.bf16.msra.mxu0 %v1072_v2  ;;  %v1076_v6 = vld [vmem:[#allocation6 + $0x10] sm:$0xff]   ;;  %v1077_v7 = vld [vmem:[#allocation6 + $0x58] sm:$0xff]   ;;  %v1079_v9 = vld [vmem:[#allocation6 + $0x60] sm:$0xff]   ;;  %994 = vmatprep.mubr.msk.bf16.mxu1 %vm1297_vm0, %v1296_v0 }
  0x70   :  { %922 = vmatprep.subr.bf16.mxu0 %v1073_v3  ;;  %v1078_v8 = vld [vmem:[#allocation6 + $0x18] sm:$0xff]   ;;  %v1080_v10 = vld [vmem:[#allocation6 + $0x20] sm:$0xff]   ;;  %v1081_v11 = vld [vmem:[#allocation6 + $0x68] sm:$0xff]  }
  0x71   :  { %v1082_v12 = vld [vmem:[#allocation6 + $0x28] sm:$0xff]   ;;  %v1089_v13 = vld [vmem:[#allocation3 + $0x4] ss:$8 sps:$4 sm:$0xff]   ;;  %v1090_v14 = vld [vmem:[#allocation8] sm:$0xff]  }
  0x72   :  { %v1083_v15 = vld [vmem:[#allocation6 + $0x70] sm:$0xff]   ;;  %302 = vmatprep.mubr.bf16.mxu0 %v1089_v13  ;;  %979 = vmatpush3.bf16.msra.mxu1 %v1090_v14  ;;  %v1091_v16 = vld [vmem:[#allocation8 + $0x8] sm:$0xff]   ;;  %v1085_v18 = vld [vmem:[#allocation6 + $0x78] sm:$0xff]  }
  0x73   :  { %923 = vmatpush3.bf16.msra.mxu0 %v1074_v4  ;;  %v1084_v17 = vld [vmem:[#allocation6 + $0x30] sm:$0xff]   ;;  %980 = vmatprep.subr.bf16.mxu1 %v1296_v0  ;;  %v1086_v20 = vld [vmem:[#allocation6 + $0x38] sm:$0xff]   ;;  %v1094_v23 = vld [vmem:[#allocation8 + $0x20] sm:$0xff]  }
  0x74   :  { %924 = vmatprep.subr.bf16.mxu0 %v1075_v5  ;;  %v1092_v19 = vld [vmem:[#allocation8 + $0x10] sm:$0xff]   ;;  %v1093_v21 = vld [vmem:[#allocation8 + $0x18] sm:$0xff]   ;;  %v1095_v24 = vld [vmem:[#allocation8 + $0x28] sm:$0xff]  }
  0x75   :  { %v1087_v22 = vld [vmem:[#allocation3] ss:$8 sps:$4 sm:$0xff]   ;;  %v1098_v27 = vld [vmem:[#allocation9] sm:$0xff]   ;;  %v1099_v28 = vld [vmem:[#allocation9 + $0x8] sm:$0xff]  }
  0x76   :  { %981 = vmatpush3.bf16.msra.mxu1 %v1091_v16  ;;  %v1096_v25 = vld [vmem:[#allocation8 + $0x30] sm:$0xff]   ;;  %v1097_v26 = vld [vmem:[#allocation8 + $0x38] sm:$0xff]   ;;  %v1102_v31 = vld [vmem:[#allocation9 + $0x20] sm:$0xff]  }
  0x77   :  { %925 = vmatpush3.bf16.msra.mxu0 %v1076_v6  ;;  %982 = vmatprep.subr.bf16.mxu1 %v1296_v0  ;;  %v1100_v29 = vld [vmem:[#allocation9 + $0x10] sm:$0xff]   ;;  %v1101_v30 = vld [vmem:[#allocation9 + $0x18] sm:$0xff]   ;;  %v1103_v32 = vld [vmem:[#allocation9 + $0x28] sm:$0xff]  }
  0x78   :  { %926 = vmatprep.subr.bf16.mxu0 %v1077_v7  ;;  %v881_v35 = vld [vmem:[%s1528_s2] ss:$0 sm:$0xff]  ;;  %v1105_v46 = vld [vmem:[#allocation9 + $0x38] sm:$0xff]   ;;  %v1106_v47 = vld [vmem:[#allocation11] sm:$0xff]  }
  0x79   :  { %v1104_v45 = vld [vmem:[#allocation9 + $0x30] sm:$0xff]   ;;  %v1107_v48 = vld [vmem:[#allocation11 + $0x8] sm:$0xff]   ;;  %v1109_v50 = vld [vmem:[#allocation11 + $0x18] sm:$0xff]  }
  0x7a   :  { %983 = vmatpush3.bf16.msra.mxu1 %v1092_v19  ;;  %v1108_v49 = vld [vmem:[#allocation11 + $0x10] sm:$0xff]   ;;  %v1110_v51 = vld [vmem:[#allocation11 + $0x20] sm:$0xff]   ;;  %v1111_v52 = vld [vmem:[#allocation11 + $0x28] sm:$0xff]  }
  0x7b   :  { %927 = vmatpush3.bf16.msra.mxu0 %v1078_v8  ;;  %984 = vmatprep.subr.bf16.mxu1 %v1296_v0  ;;  %v882_v53 = vld [vmem:[%s1530_s4] ss:$0 sm:$0xff]  ;;  %v1113_v1 = vld [vmem:[#allocation11 + $0x38] sm:$0xff]   ;;  %v1114_v2 = vld [vmem:[#allocation12] sm:$0xff]  }
  0x7c   :  { %928 = vmatprep.subr.bf16.mxu0 %v1079_v9  ;;  %v1112_v63 = vld [vmem:[#allocation11 + $0x30] sm:$0xff]   ;;  %v1115_v3 = vld [vmem:[#allocation12 + $0x8] sm:$0xff]   ;;  %v1117_v5 = vld [vmem:[#allocation12 + $0x18] sm:$0xff]  }
  0x7d   :  { %v1116_v4 = vld [vmem:[#allocation12 + $0x10] sm:$0xff]   ;;  %v1118_v6 = vld [vmem:[#allocation12 + $0x20] sm:$0xff]   ;;  %v1119_v7 = vld [vmem:[#allocation12 + $0x28] sm:$0xff]  }
  0x7e   :  { %985 = vmatpush3.bf16.msra.mxu1 %v1093_v21  ;;  %v891_v8 = vld [vmem:[%s1532_s6] ss:$0 sm:$0xff]  ;;  %v1121_v19 = vld [vmem:[#allocation12 + $0x38] sm:$0xff]  }
  0x7f   :  { %929 = vmatpush3.bf16.msra.mxu0 %v1080_v10  ;;  %986 = vmatprep.subr.bf16.mxu1 %v1296_v0 }
  0x80   :  { %930 = vmatprep.subr.bf16.mxu0 %v1081_v11 }
  0x82   :  { %987 = vmatpush3.bf16.msra.mxu1 %v1094_v23 }
  0x83   :  { %931 = vmatpush3.bf16.msra.mxu0 %v1082_v12  ;;  %988 = vmatprep.subr.bf16.mxu1 %v1296_v0 }
  0x84   :  { %932 = vmatprep.subr.bf16.mxu0 %v1083_v15 }
  0x86   :  { %989 = vmatpush3.bf16.msra.mxu1 %v1095_v24 }
  0x87   :  { %933 = vmatpush3.bf16.msra.mxu0 %v1084_v17  ;;  %990 = vmatprep.subr.bf16.mxu1 %v1296_v0 }
  0x88   :  { %934 = vmatprep.subr.bf16.mxu0 %v1085_v18  ;;  %v1120_v18 = vld [vmem:[#allocation12 + $0x30] sm:$0xff]  }
  0x8a   :  { %991 = vmatpush3.bf16.msra.mxu1 %v1096_v25 }
  0x8b   :  { %935 = vmatpush3.bf16.msra.mxu0 %v1086_v20  ;;  %992 = vmatprep.subr.bf16.mxu1 %v1296_v0  ;;  %v900_v20 = vld [vmem:[%s1534_s8] ss:$0 sm:$0xff]  ;;  %s1298_s8 = smov [#allocation14]  }
  0x8c   :  { %998 = vmatprep.subr.bf16.mxu0 %v1296_v0 }
  0x8e   :  { %303 = vmatmul.mubr.bf16.vlgmr.msra.gmra.mrb[0].mxu0 %v1087_v22  ;;  %993 = vmatpush3.bf16.msra.mxu1 %v1097_v26 }
  0x8f   :  { %1014 = vmatprep.mubr.msk.bf16.mxu0 %vm1297_vm0, %v1296_v0  ;;  %1018 = vmatprep.subr.bf16.mxu1 %v1296_v0 }
  0x90   :  { %999 = vmatpush3.bf16.msra.mxu0 %v1098_v27 }
  0x91   :  { %1000 = vmatprep.subr.bf16.mxu0 %v1296_v0 }
  0x94   :  { %1001 = vmatpush3.bf16.msra.mxu0 %v1099_v28 }
  0x95   :  { %1002 = vmatprep.subr.bf16.mxu0 %v1296_v0 }
  0x98   :  { %1003 = vmatpush3.bf16.msra.mxu0 %v1100_v29 }
  0x99   :  { %1004 = vmatprep.subr.bf16.mxu0 %v1296_v0 }
  0x9c   :  { %1005 = vmatpush3.bf16.msra.mxu0 %v1101_v30  ;;  %v789_v30 = vlaneseq }
  0x9d   :  { %1006 = vmatprep.subr.bf16.mxu0 %v1296_v0 }
  0xa0   :  { %1007 = vmatpush3.bf16.msra.mxu0 %v1102_v31  ;;  %v1501_v31 = vand.u32 127, %v789_v30 }
  0xa1   :  { %1008 = vmatprep.subr.bf16.mxu0 %v1296_v0 }
  0xa2   :  { %vm791_vm1 = vcmp.ge.s32.totalorder %v1501_v31, 4  ;;  %vm792_vm2 = vcmp.lt.s32.totalorder %v1501_v31, 34  ;;  %vm838_vm8 = vcmp.eq.s32.totalorder %v1501_v31, 34 }
  0xa3   :  { %vm793_vm3 = vmand %vm791_vm1, %vm792_vm2 }
  0xa4   :  { %1009 = vmatpush3.bf16.msra.mxu0 %v1103_v32 }
  0xa5   :  { %1010 = vmatprep.subr.bf16.mxu0 %v1296_v0 }
  0xa8   :  { %1011 = vmatpush3.bf16.msra.mxu0 %v1104_v45 }
  0xa9   :  { %1012 = vmatprep.subr.bf16.mxu0 %v1296_v0 }
  0xac   :  { %1013 = vmatpush3.bf16.msra.mxu0 %v1105_v46 }
  0xad   :  { %1038 = vmatprep.subr.bf16.mxu0 %v1296_v0 }
 0x161   :  { %v936_v33 = vpop.f32.mrb[0].mxu0 }
 0x162   :  { %v937_v34 = vpop.f32.mrb[1].mxu0 }
 0x163   :  { %v938_v36 = vadd.f32 %v937_v34, %v936_v33  ;;  %v939_v37 = vpop.f32.mrb[2].mxu0 }
 0x164   :  { %v940_v38 = vpop.f32.mrb[3].mxu0 }
 0x165   :  { %v327_v39 = vadd.f32 %v938_v36, %v881_v35  ;;  %v941_v40 = vadd.f32 %v940_v38, %v939_v37 }
 0x167   :  { %v328_v41 = vadd.f32 %v941_v40, %v881_v35  ;;  %v329_v42 = vmax.f32 %v327_v39, 0.0 }
 0x169   :  { %v330_v43 = vmax.f32 %v328_v41, 0.0 }
 0x16b   :  { %v331_v44 = vpack.c.bf16 %v330_v43, %v329_v42 }
 0x16d   :  { %995 = vmatmul.mubr.bf16.vlgmr.msra.gmra.mrb[0].mxu1 %v331_v44 }
 0x16e   :  { %1034 = vmatprep.mubr.msk.bf16.mxu1 %vm1297_vm0, %v1296_v0  ;;  %1019 = vmatpush3.bf16.msra.mxu1 %v1106_v47 }
 0x16f   :  { %1020 = vmatprep.subr.bf16.mxu1 %v1296_v0 }
 0x172   :  { %1021 = vmatpush3.bf16.msra.mxu1 %v1107_v48 }
 0x173   :  { %1022 = vmatprep.subr.bf16.mxu1 %v1296_v0 }
 0x176   :  { %1023 = vmatpush3.bf16.msra.mxu1 %v1108_v49 }
 0x177   :  { %1024 = vmatprep.subr.bf16.mxu1 %v1296_v0 }
 0x17a   :  { %1025 = vmatpush3.bf16.msra.mxu1 %v1109_v50 }
 0x17b   :  { %1026 = vmatprep.subr.bf16.mxu1 %v1296_v0 }
 0x17e   :  { %1027 = vmatpush3.bf16.msra.mxu1 %v1110_v51 }
 0x17f   :  { %1028 = vmatprep.subr.bf16.mxu1 %v1296_v0 }
 0x182   :  { %1029 = vmatpush3.bf16.msra.mxu1 %v1111_v52 }
 0x183   :  { %1030 = vmatprep.subr.bf16.mxu1 %v1296_v0 }
 0x186   :  { %1031 = vmatpush3.bf16.msra.mxu1 %v1112_v63 }
 0x187   :  { %1032 = vmatprep.subr.bf16.mxu1 %v1296_v0 }
 0x18a   :  { %1033 = vmatpush3.bf16.msra.mxu1 %v1113_v1 }
 0x240   :  { %v437_v54 = vpop.f32.mrb[0].mxu1 }
 0x241   :  { %v438_v55 = vadd.f32 %v882_v53, %v437_v54  ;;  %v996_v56 = vpop.f32.mrb[1].mxu1 }
 0x242   :  { %v440_v57 = vpop.f32.mrb[2].mxu1 }
 0x243   :  { %v441_v58 = vadd.f32 %v882_v53, %v440_v57  ;;  %v997_v59 = vpop.f32.mrb[3].mxu1  ;;  %v444_v60 = vmax.f32 %v438_v55, 0.0 }
 0x245   :  { %v445_v61 = vmax.f32 %v441_v58, 0.0 }
 0x247   :  { %v446_v62 = vpack.c.bf16 %v445_v61, %v444_v60 }
 0x249   :  { %1015 = vmatmul.mubr.bf16.vlgmr.msra.gmra.mrb[4].mxu0 %v446_v62 }
 0x24a   :  { %1054 = vmatprep.mubr.msk.bf16.mxu0 %vm1297_vm0, %v1296_v0  ;;  %1039 = vmatpush3.bf16.msra.mxu0 %v1114_v2 }
 0x24b   :  { %1040 = vmatprep.subr.bf16.mxu0 %v1296_v0 }
 0x24e   :  { %1041 = vmatpush3.bf16.msra.mxu0 %v1115_v3 }
 0x24f   :  { %1042 = vmatprep.subr.bf16.mxu0 %v1296_v0 }
 0x252   :  { %1043 = vmatpush3.bf16.msra.mxu0 %v1116_v4 }
 0x253   :  { %1044 = vmatprep.subr.bf16.mxu0 %v1296_v0 }
 0x256   :  { %1045 = vmatpush3.bf16.msra.mxu0 %v1117_v5 }
 0x257   :  { %1046 = vmatprep.subr.bf16.mxu0 %v1296_v0 }
 0x25a   :  { %1047 = vmatpush3.bf16.msra.mxu0 %v1118_v6 }
 0x25b   :  { %1048 = vmatprep.subr.bf16.mxu0 %v1296_v0 }
 0x25e   :  { %1049 = vmatpush3.bf16.msra.mxu0 %v1119_v7 }
 0x25f   :  { %1050 = vmatprep.subr.bf16.mxu0 %v1296_v0 }
 0x262   :  { %1051 = vmatpush3.bf16.msra.mxu0 %v1120_v18 }
 0x263   :  { %1052 = vmatprep.subr.bf16.mxu0 %v1296_v0  ;;  %v909_v0 = vld [vmem:[%s1536_s10] ss:$0 sm:$0xff]  ;;  %s848_s10 = sshll.u32 %s1298_s8, 4  ;;  %s849_s10 = int_to_ptr.vmem [resolvable:$true] %s848_s10 }
 0x264   :  { %s1254_s18 = scalar_lea.vmem %s849_s10, 256  ;;  %p1259_p7 = scmp.lt.s32.totalorder %s849_s10, %s849_s10 }
 0x265   :  { %p1255_p6 = scmp.ne.s32.totalorder %s849_s10, %s1254_s18  ;;  %p1260_p8 = scmp.lt.s32.totalorder %s1254_s18, %s1254_s18 }
 0x266   :  { %1053 = vmatpush3.bf16.msra.mxu0 %v1121_v19 }
 0x267   :  { %p1261_p9 = por %p1260_p8, %p1259_p7 }
 0x269   :  { %p1262_p10 = pnand %p1261_p9, %p1255_p6 }
 0x31c   :  { %v552_v9 = vpop.f32.mrb[4].mxu0 }
 0x31d   :  { %v553_v10 = vadd.f32 %v891_v8, %v552_v9  ;;  %v1016_v11 = vpop.f32.mrb[5].mxu0 }
 0x31e   :  { %v555_v12 = vpop.f32.mrb[6].mxu0 }
 0x31f   :  { %v556_v13 = vadd.f32 %v891_v8, %v555_v12  ;;  %v1017_v14 = vpop.f32.mrb[7].mxu0  ;;  %v559_v15 = vmax.f32 %v553_v10, 0.0 }
 0x321   :  { %v560_v16 = vmax.f32 %v556_v13, 0.0 }
 0x323   :  { %v561_v17 = vpack.c.bf16 %v560_v16, %v559_v15 }
 0x325   :  { %1035 = vmatmul.mubr.bf16.vlgmr.msra.gmra.mrb[4].mxu1 %v561_v17 }
 0x3f8   :  { %v667_v21 = vpop.f32.mrb[4].mxu1 }
 0x3f9   :  { %v668_v22 = vadd.f32 %v900_v20, %v667_v21  ;;  %v1036_v23 = vpop.f32.mrb[5].mxu1 }
 0x3fa   :  { %v670_v24 = vpop.f32.mrb[6].mxu1 }
 0x3fb   :  { %v671_v25 = vadd.f32 %v900_v20, %v670_v24  ;;  %v1037_v26 = vpop.f32.mrb[7].mxu1  ;;  %v674_v27 = vmax.f32 %v668_v22, 0.0 }
 0x3fd   :  { %v675_v28 = vmax.f32 %v671_v25, 0.0 }
 0x3ff   :  { %v676_v29 = vpack.c.bf16 %v675_v28, %v674_v27 }
 0x401   :  { %1055 = vmatmul.mubr.bf16.vlgmr.msra.gmra.mrb[8].mxu0 %v676_v29 }
 0x4d4   :  { %v782_v32 = vpop.f32.mrb[8].mxu0 }
 0x4d5   :  { %v783_v33 = vadd.f32 %v909_v0, %v782_v32  ;;  %v1056_v34 = vpop.f32.mrb[9].mxu0 }
 0x4d6   :  { %v785_v35 = vpop.f32.mrb[10].mxu0 }
 0x4d7   :  { %v786_v36 = vadd.f32 %v909_v0, %v785_v35  ;;  %v1057_v37 = vpop.f32.mrb[11].mxu0  ;;  %v794_v38 = vsel %vm793_vm3, %v783_v33, -inf }
 0x4d8   :  { %796 = vmax.xlane.f32.xlu0 %v794_v38 }
 0x4d9   :  { %v795_v39 = vsel %vm793_vm3, %v786_v36, -inf }
 0x4dc   :  { %798 = vmax.xlane.f32.xlu0 %v795_v39 }
 0x565   :  { %v797_v40 = vpop.xlane.xlu0 %796 }
 0x566   :  { %vm800_vm4 = vcmp.eq.f32.partialorder %v794_v38, %v797_v40 }
 0x567   :  { %v802_v41 = vsel %vm800_vm4, %v1501_v31, 128 }
 0x568   :  { %v805_v42 = vshra.s32 %v802_v41, 16  ;;  %v804_v48 = vand.u32 65535, %v802_v41 }
 0x569   :  { %v799_v43 = vpop.xlane.xlu0 %798 }
 0x56a   :  { %vm801_vm5 = vcmp.eq.f32.partialorder %v795_v39, %v799_v43  ;;  %v807_v44 = vcvt.s32.f32 %v805_v42  ;;  %v806_v51 = vcvt.s32.f32 %v804_v48 }
 0x56b   :  { %v803_v45 = vsel %vm801_vm5, %v1501_v31, 128 }
 0x56c   :  { %808 = vmin.xlane.f32.xlu1 %v807_v44  ;;  %v819_v46 = vshra.s32 %v803_v45, 16  ;;  %v818_v49 = vand.u32 65535, %v803_v45 }
 0x56e   :  { %v821_v47 = vcvt.s32.f32 %v819_v46  ;;  %v820_v54 = vcvt.s32.f32 %v818_v49 }
 0x570   :  { %822 = vmin.xlane.f32.xlu1 %v821_v47 }
 0x5f9   :  { %v809_v50 = vpop.xlane.xlu1 %808 }
 0x5fa   :  { %vm810_vm6 = vcmp.eq.f32.partialorder %v807_v44, %v809_v50  ;;  %v815_v56 = vcvt.f32.s32 %v809_v50 }
 0x5fb   :  { %v811_v52 = vsel %vm810_vm6, %v806_v51, inf }
 0x5fc   :  { %812 = vmin.xlane.f32.xlu0 %v811_v52  ;;  %v816_v58 = vshll.u32 %v815_v56, 16 }
 0x5fd   :  { %v823_v53 = vpop.xlane.xlu1 %822 }
 0x5fe   :  { %vm824_vm7 = vcmp.eq.f32.partialorder %v821_v47, %v823_v53  ;;  %v829_v59 = vcvt.f32.s32 %v823_v53 }
 0x5ff   :  { %v825_v55 = vsel %vm824_vm7, %v820_v54, inf }
 0x600   :  { %826 = vmin.xlane.f32.xlu1 %v825_v55  ;;  %v830_v63 = vshll.u32 %v829_v59, 16 }
 0x689   :  { %v813_v57 = vpop.xlane.xlu0 %812 }
 0x68a   :  { %v814_v60 = vcvt.f32.s32 %v813_v57 }
 0x68c   :  { %v817_v61 = vadd.s32 %v816_v58, %v814_v60 }
 0x68d   :  { %v827_v62 = vpop.xlane.xlu1 %826 }
 0x68e   :  { %v918_v1 = vadd.s32 4294967292, %v817_v61  ;;  %v828_v2 = vcvt.f32.s32 %v827_v62 }
 0x690   :  { %v834_v3 = vadd.s32 1, %v918_v1  ;;  %v831_v4 = vadd.s32 %v830_v63, %v828_v2 }
 0x692   :  { %v836_v5 = vcvt.s32.f32 %v834_v3  ;;  %v919_v6 = vadd.s32 4294967292, %v831_v4 }
 0x694   :  { %v835_v7 = vadd.s32 1, %v919_v6  ;;  %v839_v8 = vsel %vm838_vm8, %v836_v5, %v783_v33 }
 0x695   :  { %841 = vst [vmem:[#allocation14] sm:$0xff] %v839_v8 }
 0x696   :  { %v837_v9 = vcvt.s32.f32 %v835_v7 }
 0x698   :  { %v840_v10 = vsel %vm838_vm8, %v837_v9, %v786_v36 }
 0x699   :  { %842 = vst [vmem:[#allocation14 + $0x8] sm:$0xff] %v840_v10 }
 0x69a   :  { %1265 = shalt.err (!%p1262_p10)
}
 0x69b   :  { %s1266_s22 = scalar_lea.hbm %s1537_s11, 256 }
 0x69c   :  { %p1267_p11 = scmp.ne.s32.totalorder %s1537_s11, %s1266_s22  ;;  %p1270_p12 = scmp.lt.u32.totalorder %s1266_s22, %s1537_s11 }
 0x69e   :  { %p1272_p13 = pnand %p1270_p12, %p1267_p11 }
 0x6a0   :  { %1275 = shalt.err (!%p1272_p13)
}
 0x6a1   :  { %854 = dma.vmem_to_hbm [thread:$0]  %s849_s10, 256, %s1537_s11, [#allocation5], %s1291_s5, %s1291_s5, %s1292_s13  }
 0x6a2   :  { %1284 = dma.done.wait [#allocation5], 256  }
 0x6a3   :  { %1285 = vsyncadd [#allocation5], 4294967040 }
 0x6a4   :  { %858 = vsyncpa [#allocation4], 1 }
 0x6a5   :  { %859 = vsyncpa [#allocation7], 1 }
 0x6a6   :  { %860 = vsyncpa [#allocation10], 1 }
 0x6a7   :  { %861 = vsyncpa [#allocation13], 1 }
 0x6a8   :  { %862 = vsyncpa [#allocation5], 1 }

</bundles_post_ra>
